<compile_context>
chip_gen: v6e
topology: v6e:2x2x1
jax: 0.10.0
libtpu: 0.0.40
codegen_flags: <defaults>
</compile_context>

<pallas_src>
import functools
import math

import jax
import jax.numpy as jnp
from jax.experimental import pallas as pl
from jax.experimental.pallas import tpu as pltpu


def _round_up(x, m):
    return (x + m - 1) // m * m


def _resident_spec(arr):
    """Full-array block with a constant index_map: fetched to VMEM once,
    stays resident across all grid steps."""
    zeros = (0,) * arr.ndim
    return pl.BlockSpec(arr.shape, lambda *_: zeros)


# ----------------------------------------------------------------------------
# Single fused kernel: init state (t==0) + attention + gate + LSTMCell
#                      + output Linear + log_softmax, per grid step t.
# ----------------------------------------------------------------------------
def _decoder_kernel(gate_ref,                                   # SMEM [max_len]
                    feat_ref, din_ref,
                    w_init_ref, b_init_ref,
                    w1_ref, b1_ref, w2_ref, b2_ref, w3_ref, b3_ref,
                    wfb_ref, bfb_ref,
                    wih_e_ref, wih_c_ref, bih_ref, whh_ref, bhh_ref,
                    wfc_ref, bfc_ref,
                    preds_ref, alpha_ref,                       # outputs
                    h_sc, c_sc,                                 # VMEM scratch
                    *, pad_fill):
    t = pl.program_id(0)
    bs, P, E = feat_ref.shape
    D = h_sc.shape[1]
    A = w1_ref.shape[1]

    # ---- init_hidden_state fused into step 0 (mean over pixels, [E,2D] fc) --
    @pl.when(t == 0)
    def _():
        mean = jnp.mean(feat_ref[...], axis=1)                  # [bs, E]
        hc = jnp.dot(mean, w_init_ref[...],
                     preferred_element_type=jnp.float32) + b_init_ref[...]
        h_sc[...] = hc[:, :D]
        c_sc[...] = hc[:, D:]

    feat = feat_ref[...]                                        # [bs, P, E]
    h = h_sc[...]                                               # [bs, D]
    c = c_sc[...]                                               # [bs, D]
    emb = din_ref[0]                                            # [bs, Em]

    # ---- Attention (Bahdanau) ----
    enc_f = (jnp.dot(feat.reshape(bs * P, E), w1_ref[...],
                     preferred_element_type=jnp.float32)
             + b1_ref[...]).reshape(bs, P, A)                   # fc1(features)
    ph = jnp.dot(h, w2_ref[...],
                 preferred_element_type=jnp.float32) + b2_ref[...]   # fc2(h)
    tt = jnp.tanh(enc_f + ph.reshape(bs, 1, A))                 # [bs, P, A]
    # fc3 (A -> 1) as VPU broadcast-mul + lane reduce instead of a 1-wide matmul
    scores = jnp.sum(tt * w3_ref[...].reshape(1, 1, A), axis=-1) + b3_ref[...]
    m = jnp.max(scores, axis=1, keepdims=True)
    e = jnp.exp(scores - m)
    aw = e * pl.reciprocal(jnp.sum(e, axis=1, keepdims=True), approx=True)
    context = jnp.sum(feat * aw[:, :, None], axis=1)            # [bs, E]

    # ---- gate = sigmoid(f_beta(h)) ----
    gate = jax.nn.sigmoid(jnp.dot(h, wfb_ref[...],
                                  preferred_element_type=jnp.float32)
                          + bfb_ref[...])                       # [bs, E]
    context = gate * context

    # ---- LSTMCell, concat-free (split input weight into emb / context) ----
    gates = (jnp.dot(emb, wih_e_ref[...], preferred_element_type=jnp.float32)
             + jnp.dot(context, wih_c_ref[...], preferred_element_type=jnp.float32)
             + jnp.dot(h, whh_ref[...], preferred_element_type=jnp.float32)
             + bih_ref[...] + bhh_ref[...])                     # [bs, 4D]
    i_g = jax.nn.sigmoid(gates[:, 0:D])
    f_g = jax.nn.sigmoid(gates[:, D:2 * D])
    g_g = jnp.tanh(gates[:, 2 * D:3 * D])
    o_g = jax.nn.sigmoid(gates[:, 3 * D:4 * D])
    c_new = f_g * c + i_g * g_g
    h_new = o_g * jnp.tanh(c_new)
    # h/c stay VMEM-resident across steps; rows past their caption length are
    # updated too, but (gate_idx is non-increasing) they are never read for
    # any output -> identical semantics to the PyTorch [:gate_idx] slicing.
    h_sc[...] = h_new
    c_sc[...] = c_new

    # ---- output Linear (dropout = identity in eval) + fused log_softmax ----
    logits = jnp.dot(h_new, wfc_ref[...],
                     preferred_element_type=jnp.float32) + bfc_ref[...]  # [bs, Vp]
    lm = jnp.max(logits, axis=-1, keepdims=True)
    s = logits - lm
    lse = jnp.log(jnp.sum(jnp.exp(s), axis=-1, keepdims=True))
    logp = s - lse

    # ---- gate_idx masking (emulates `predictions[:gate_idx, step] = ...`) ----
    gi = gate_ref[t]
    row = jax.lax.broadcasted_iota(jnp.int32, (bs, 1), 0)
    mask = row < gi                                             # [bs, 1]
    # masked rows: log_softmax of a zero row == -log(V)  (matches PyTorch)
    preds_ref[0] = jnp.where(mask, logp, pad_fill)
    alpha_ref[0] = jnp.where(mask, aw, 0.0)


# ----------------------------------------------------------------------------
# Full Decoder.forward (teacher_forcing = 1, random_top_k = 0)
# ----------------------------------------------------------------------------
def decoder_forward(features_nhwc, targets, cap_lengths, params):
    bs = features_nhwc.shape[0]
    E = params["w1"].shape[0]                     # encoder_dim
    A = params["w1"].shape[1]                     # attention_dim
    D = params["w_init_h"].shape[1]               # decoder_dim
    V = params["wfc"].shape[1]                    # vocab_size
    Em = params["embed"].shape[1]                 # embed_dim

    features = features_nhwc.reshape(bs, -1, E).astype(jnp.float32)
    P = features.shape[1]                         # num_pixels

    original_lengths = [int(l) for l in cap_lengths]
    max_len = max(original_lengths)

    # ---- pad batch to sublane multiple, vocab to lane multiple -------------
    bs_p = max(_round_up(bs, 8), 8)
    V_p = _round_up(V, 128)
    if bs_p != bs:
        features = jnp.pad(features, ((0, bs_p - bs), (0, 0), (0, 0)))

    # ---- per-step decoder inputs (teacher forcing = 1) ----------------------
    embeddings = jnp.take(params["embed"], targets, axis=0)     # [bs, T, Em]
    start_emb = jnp.broadcast_to(
        params["embed"][params["start_id"]][None, :], (bs, Em))
    dec_seq = jnp.swapaxes(embeddings, 0, 1)                    # [T, bs, Em]
    dec_inputs = jnp.concatenate([start_emb[None], dec_seq[:max_len - 1]],
                                 axis=0)                        # [max_len, bs, Em]
    if bs_p != bs:
        dec_inputs = jnp.pad(dec_inputs, ((0, 0), (0, bs_p - bs), (0, 0)))

    # ---- weight prep: merged init fc, split LSTM w_ih, padded vocab fc ------
    w_init = jnp.concatenate([params["w_init_h"], params["w_init_c"]], axis=1)
    b_init = jnp.concatenate([params["b_init_h"], params["b_init_c"]], axis=1)
    wih_e = params["wih"][:Em]                                   # [Em, 4D]
    wih_c = params["wih"][Em:]                                   # [E, 4D]
    w3_row = params["w3"].reshape(1, A)                          # [1, A]
    wfc = params["wfc"]
    bfc = params["bfc"]
    if V_p != V:
        # zero weight columns + -1e30 bias keep log_softmax exact on real cols
        wfc = jnp.pad(wfc, ((0, 0), (0, V_p - V)))
        bfc = jnp.pad(bfc, ((0, 0), (0, V_p - V)), constant_values=-1e30)

    # ---- precomputed gate_idx schedule (scalar prefetch) --------------------
    gate_idx = jnp.asarray(
        [sum(int(l > step) for l in original_lengths) for step in range(max_len)],
        dtype=jnp.int32)

    in_specs = [
        _resident_spec(features),                                       # feat
        pl.BlockSpec((1, bs_p, Em), lambda t, gi: (t, 0, 0)),           # dec_inputs
        _resident_spec(w_init), _resident_spec(b_init),
        _resident_spec(params["w1"]), _resident_spec(params["b1"]),
        _resident_spec(params["w2"]), _resident_spec(params["b2"]),
        _resident_spec(w3_row), _resident_spec(params["b3"]),
        _resident_spec(params["wfb"]), _resident_spec(params["bfb"]),
        _resident_spec(wih_e), _resident_spec(wih_c), _resident_spec(params["bih"]),
        _resident_spec(params["whh"]), _resident_spec(params["bhh"]),
        _resident_spec(wfc), _resident_spec(bfc),
    ]
    out_specs = [
        pl.BlockSpec((1, bs_p, V_p), lambda t, gi: (t, 0, 0)),
        pl.BlockSpec((1, bs_p, P), lambda t, gi: (t, 0, 0)),
    ]

    grid_spec = pltpu.PrefetchScalarGridSpec(
        num_scalar_prefetch=1,
        grid=(max_len,),
        in_specs=in_specs,
        out_specs=out_specs,
        scratch_shapes=[pltpu.VMEM((bs_p, D), jnp.float32),   # h
                        pltpu.VMEM((bs_p, D), jnp.float32)],  # c
    )

    kernel = functools.partial(_decoder_kernel, pad_fill=-math.log(float(V)))

    preds_tbv, alphas_tbp = pl.pallas_call(
        kernel,
        out_shape=(jax.ShapeDtypeStruct((max_len, bs_p, V_p), jnp.float32),
                   jax.ShapeDtypeStruct((max_len, bs_p, P), jnp.float32)),
        grid_spec=grid_spec,
        compiler_params=pltpu.CompilerParams(
            dimension_semantics=("arbitrary",)),   # recurrent time axis
    )(gate_idx, features, dec_inputs,
      w_init, b_init,
      params["w1"], params["b1"], params["w2"], params["b2"], w3_row, params["b3"],
      params["wfb"], params["bfb"],
      wih_e, wih_c, params["bih"], params["whh"], params["bhh"],
      wfc, bfc)

    predictions = jnp.swapaxes(preds_tbv, 0, 1)[:bs, :, :V]     # [bs, max_len, V]
    alphas = jnp.swapaxes(alphas_tbp, 0, 1)[:bs]                # [bs, max_len, P]
    return predictions, original_lengths, alphas


# ----------------------------------------------------------------------------
# Deterministic parameter construction + demo
# ----------------------------------------------------------------------------
def make_params(key, *, encoder_dim, decoder_dim, attention_dim,
                embed_dim, vocab_size):
    ks = jax.random.split(key, 20)
    n = lambda k, shape, s=0.1: (s * jax.random.normal(k, shape)).astype(jnp.float32)
    params = {
        # Attention
        "w1": n(ks[0], (encoder_dim, attention_dim)),
        "b1": n(ks[1], (1, attention_dim)),
        "w2": n(ks[2], (decoder_dim, attention_dim)),
        "b2": n(ks[3], (1, attention_dim)),
        "w3": n(ks[4], (attention_dim, 1)),
        "b3": n(ks[5], (1, 1)),
        # f_beta
        "wfb": n(ks[6], (decoder_dim, encoder_dim)),
        "bfb": n(ks[7], (1, encoder_dim)),
        # LSTMCell (i, f, g, o)
        "wih": n(ks[8], (embed_dim + encoder_dim, 4 * decoder_dim)),
        "bih": n(ks[9], (1, 4 * decoder_dim)),
        "whh": n(ks[10], (decoder_dim, 4 * decoder_dim)),
        "bhh": n(ks[11], (1, 4 * decoder_dim)),
        # output fc (hidden_dim == decoder_dim)
        "wfc": n(ks[12], (decoder_dim, vocab_size)),
        "bfc": n(ks[13], (1, vocab_size)),
        # init_h / init_c
        "w_init_h": n(ks[14], (encoder_dim, decoder_dim)),
        "b_init_h": n(ks[15], (1, decoder_dim)),
        "w_init_c": n(ks[16], (encoder_dim, decoder_dim)),
        "b_init_c": n(ks[17], (1, decoder_dim)),
        # embedding table
        "embed": n(ks[18], (vocab_size, embed_dim), 0.5),
        "start_id": 1,
    }
    return params


if __name__ == "__main__":
    # small cfg: encoder_dim=32, decoder_dim=hidden_dim=32, attention_dim=16,
    #            embed_dim=16, vocab_size=24, bs=4, spatial 4x4 -> 16 pixels
    bs, H1, W1 = 4, 4, 4
    encoder_dim, decoder_dim, attention_dim, embed_dim = 32, 32, 16, 16
    vocab_size, seq_len = 24, 9

    key = jax.random.PRNGKey(0)
    k_feat, k_tgt, k_params = jax.random.split(key, 3)

    features = jax.random.normal(k_feat, (bs, H1, W1, encoder_dim),
                                 dtype=jnp.float32)           # [bs, h1, w1, depth]
    targets = jax.random.randint(k_tgt, (bs, seq_len), 0, vocab_size,
                                 dtype=jnp.int32)             # [bs, seq_len]
    cap_lengths = [9, 7, 5, 3]                                # sorted descending

    params = make_params(k_params,
                         encoder_dim=encoder_dim, decoder_dim=decoder_dim,
                         attention_dim=attention_dim, embed_dim=embed_dim,
                         vocab_size=vocab_size)

    predictions, lengths, alphas = decoder_forward(features, targets,
                                                   cap_lengths, params)
    predictions = jax.block_until_ready(predictions)
    alphas = jax.block_until_ready(alphas)

    assert predictions.shape == (bs, max(cap_lengths), vocab_size)
    assert alphas.shape == (bs, max(cap_lengths), H1 * W1)
    assert bool(jnp.all(jnp.isfinite(predictions)))
    assert bool(jnp.all(jnp.isfinite(alphas)))
    print("KERNEL_OK")
</pallas_src>

<mosaic_0001>
module attributes {stable_mosaic.version = 11 : i64} {
  func.func @_decoder_kernel(%arg0: i32, %arg1: memref<9xi32, #tpu.memory_space<smem>>, %arg2: memref<8x16x32xf32, #tpu.memory_space<vmem>>, %arg3: memref<1x8x16xf32, #tpu.memory_space<vmem>>, %arg4: memref<32x64xf32, #tpu.memory_space<vmem>>, %arg5: memref<1x64xf32, #tpu.memory_space<vmem>>, %arg6: memref<32x16xf32, #tpu.memory_space<vmem>>, %arg7: memref<1x16xf32, #tpu.memory_space<vmem>>, %arg8: memref<32x16xf32, #tpu.memory_space<vmem>>, %arg9: memref<1x16xf32, #tpu.memory_space<vmem>>, %arg10: memref<1x16xf32, #tpu.memory_space<vmem>>, %arg11: memref<1x1xf32, #tpu.memory_space<vmem>>, %arg12: memref<32x32xf32, #tpu.memory_space<vmem>>, %arg13: memref<1x32xf32, #tpu.memory_space<vmem>>, %arg14: memref<16x128xf32, #tpu.memory_space<vmem>>, %arg15: memref<32x128xf32, #tpu.memory_space<vmem>>, %arg16: memref<1x128xf32, #tpu.memory_space<vmem>>, %arg17: memref<32x128xf32, #tpu.memory_space<vmem>>, %arg18: memref<1x128xf32, #tpu.memory_space<vmem>>, %arg19: memref<32x128xf32, #tpu.memory_space<vmem>>, %arg20: memref<1x128xf32, #tpu.memory_space<vmem>>, %arg21: memref<1x8x128xf32, #tpu.memory_space<vmem>>, %arg22: memref<1x8x16xf32, #tpu.memory_space<vmem>>, %arg23: memref<8x32xf32, #tpu.memory_space<vmem>>, %arg24: memref<8x32xf32, #tpu.memory_space<vmem>>) attributes {dimension_semantics = [#tpu.dimension_semantics<arbitrary>], iteration_bounds = array<i64: 9>, scalar_prefetch = 1 : i64, scratch_operands = 2 : i64, tpu.core_type = #tpu.core_type<tc>, window_params = [{pipeline_mode = #tpu.pipeline_mode<synchronous>, transform_indices = @transform_0, window_bounds = array<i64: 8, 16, 32>}, {transform_indices = @transform_1, window_bounds = array<i64: 1, 8, 16>}, {pipeline_mode = #tpu.pipeline_mode<synchronous>, transform_indices = @transform_2, window_bounds = array<i64: 32, 64>}, {pipeline_mode = #tpu.pipeline_mode<synchronous>, transform_indices = @transform_3, window_bounds = array<i64: 1, 64>}, {pipeline_mode = #tpu.pipeline_mode<synchronous>, transform_indices = @transform_4, window_bounds = array<i64: 32, 16>}, {pipeline_mode = #tpu.pipeline_mode<synchronous>, transform_indices = @transform_5, window_bounds = array<i64: 1, 16>}, {pipeline_mode = #tpu.pipeline_mode<synchronous>, transform_indices = @transform_6, window_bounds = array<i64: 32, 16>}, {pipeline_mode = #tpu.pipeline_mode<synchronous>, transform_indices = @transform_7, window_bounds = array<i64: 1, 16>}, {pipeline_mode = #tpu.pipeline_mode<synchronous>, transform_indices = @transform_8, window_bounds = array<i64: 1, 16>}, {pipeline_mode = #tpu.pipeline_mode<synchronous>, transform_indices = @transform_9, window_bounds = array<i64: 1, 1>}, {pipeline_mode = #tpu.pipeline_mode<synchronous>, transform_indices = @transform_10, window_bounds = array<i64: 32, 32>}, {pipeline_mode = #tpu.pipeline_mode<synchronous>, transform_indices = @transform_11, window_bounds = array<i64: 1, 32>}, {pipeline_mode = #tpu.pipeline_mode<synchronous>, transform_indices = @transform_12, window_bounds = array<i64: 16, 128>}, {pipeline_mode = #tpu.pipeline_mode<synchronous>, transform_indices = @transform_13, window_bounds = array<i64: 32, 128>}, {pipeline_mode = #tpu.pipeline_mode<synchronous>, transform_indices = @transform_14, window_bounds = array<i64: 1, 128>}, {pipeline_mode = #tpu.pipeline_mode<synchronous>, transform_indices = @transform_15, window_bounds = array<i64: 32, 128>}, {pipeline_mode = #tpu.pipeline_mode<synchronous>, transform_indices = @transform_16, window_bounds = array<i64: 1, 128>}, {pipeline_mode = #tpu.pipeline_mode<synchronous>, transform_indices = @transform_17, window_bounds = array<i64: 32, 128>}, {pipeline_mode = #tpu.pipeline_mode<synchronous>, transform_indices = @transform_18, window_bounds = array<i64: 1, 128>}, {transform_indices = @transform_19, window_bounds = array<i64: 1, 8, 128>}, {transform_indices = @transform_20, window_bounds = array<i64: 1, 8, 16>}]} {
    %c0_i32 = arith.constant 0 : i32
    %0 = arith.cmpi eq, %arg0, %c0_i32 : i32
    %1 = arith.extui %0 : i1 to i32
    %c0_i32_0 = arith.constant 0 : i32
    %2 = arith.cmpi ne, %1, %c0_i32_0 : i32
    scf.if %2 {
      %c0_68 = arith.constant 0 : index
      %c0_69 = arith.constant 0 : index
      %c0_70 = arith.constant 0 : index
      %132 = vector.load %arg2[%c0_68, %c0_69, %c0_70] : memref<8x16x32xf32, #tpu.memory_space<vmem>>, vector<8x16x32xf32>
      %cst_71 = arith.constant dense<0.000000e+00> : vector<8x32xf32>
      %133 = vector.multi_reduction <add>, %132, %cst_71 [1] : vector<8x16x32xf32> to vector<8x32xf32>
      %cst_72 = arith.constant 1.600000e+01 : f32
      %134 = vector.broadcast %cst_72 : f32 to vector<8x32xf32>
      %135 = arith.divf %133, %134 : vector<8x32xf32>
      %c0_73 = arith.constant 0 : index
      %c0_74 = arith.constant 0 : index
      %136 = vector.load %arg4[%c0_73, %c0_74] : memref<32x64xf32, #tpu.memory_space<vmem>>, vector<32x64xf32>
      %cst_75 = arith.constant dense<0.000000e+00> : vector<8x64xf32>
      %137 = tpu.matmul %135, %136, %cst_75 {dimension_numbers = #tpu.dot_dimension_numbers<[1], [0], [0], [1], [0, 0, 1, 1], [], []>} : vector<8x32xf32>, vector<32x64xf32>, vector<8x64xf32> -> vector<8x64xf32>
      %c0_76 = arith.constant 0 : index
      %c0_77 = arith.constant 0 : index
      %138 = vector.load %arg5[%c0_76, %c0_77] : memref<1x64xf32, #tpu.memory_space<vmem>>, vector<1x64xf32>
      %139 = vector.broadcast %138 : vector<1x64xf32> to vector<8x64xf32>
      %140 = arith.addf %137, %139 : vector<8x64xf32>
      %141 = vector.extract_strided_slice %140 {offsets = [0, 0], sizes = [8, 32], strides = [1, 1]} : vector<8x64xf32> to vector<8x32xf32>
      %c0_78 = arith.constant 0 : index
      %c0_79 = arith.constant 0 : index
      %142 = vector.load %arg23[%c0_78, %c0_79] : memref<8x32xf32, #tpu.memory_space<vmem>>, vector<8x32xf32>
      tpu.vector_store %arg23[%c0_78, %c0_79], %141 {strides = array<i32>} : memref<8x32xf32, #tpu.memory_space<vmem>>, vector<8x32xf32>,
      %143 = vector.extract_strided_slice %140 {offsets = [0, 32], sizes = [8, 32], strides = [1, 1]} : vector<8x64xf32> to vector<8x32xf32>
      %c0_80 = arith.constant 0 : index
      %c0_81 = arith.constant 0 : index
      %144 = vector.load %arg24[%c0_80, %c0_81] : memref<8x32xf32, #tpu.memory_space<vmem>>, vector<8x32xf32>
      tpu.vector_store %arg24[%c0_80, %c0_81], %143 {strides = array<i32>} : memref<8x32xf32, #tpu.memory_space<vmem>>, vector<8x32xf32>,
    } else {
    }
    %c0 = arith.constant 0 : index
    %c0_1 = arith.constant 0 : index
    %c0_2 = arith.constant 0 : index
    %3 = vector.load %arg2[%c0, %c0_1, %c0_2] : memref<8x16x32xf32, #tpu.memory_space<vmem>>, vector<8x16x32xf32>
    %c0_3 = arith.constant 0 : index
    %c0_4 = arith.constant 0 : index
    %4 = vector.load %arg23[%c0_3, %c0_4] : memref<8x32xf32, #tpu.memory_space<vmem>>, vector<8x32xf32>
    %c0_5 = arith.constant 0 : index
    %c0_6 = arith.constant 0 : index
    %5 = vector.load %arg24[%c0_5, %c0_6] : memref<8x32xf32, #tpu.memory_space<vmem>>, vector<8x32xf32>
    %c0_7 = arith.constant 0 : index
    %c0_8 = arith.constant 0 : index
    %c0_9 = arith.constant 0 : index
    %6 = vector.load %arg3[%c0_7, %c0_8, %c0_9] : memref<1x8x16xf32, #tpu.memory_space<vmem>>, vector<1x8x16xf32>
    %7 = vector.shape_cast %6 : vector<1x8x16xf32> to vector<8x16xf32>
    %8 = vector.shape_cast %3 : vector<8x16x32xf32> to vector<128x32xf32>
    %c0_10 = arith.constant 0 : index
    %c0_11 = arith.constant 0 : index
    %9 = vector.load %arg6[%c0_10, %c0_11] : memref<32x16xf32, #tpu.memory_space<vmem>>, vector<32x16xf32>
    %cst = arith.constant dense<0.000000e+00> : vector<128x16xf32>
    %10 = tpu.matmul %8, %9, %cst {dimension_numbers = #tpu.dot_dimension_numbers<[1], [0], [0], [1], [0, 0, 1, 1], [], []>} : vector<128x32xf32>, vector<32x16xf32>, vector<128x16xf32> -> vector<128x16xf32>
    %c0_12 = arith.constant 0 : index
    %c0_13 = arith.constant 0 : index
    %11 = vector.load %arg7[%c0_12, %c0_13] : memref<1x16xf32, #tpu.memory_space<vmem>>, vector<1x16xf32>
    %12 = vector.broadcast %11 : vector<1x16xf32> to vector<128x16xf32>
    %13 = arith.addf %10, %12 : vector<128x16xf32>
    %14 = vector.shape_cast %13 : vector<128x16xf32> to vector<8x16x16xf32>
    %c0_14 = arith.constant 0 : index
    %c0_15 = arith.constant 0 : index
    %15 = vector.load %arg8[%c0_14, %c0_15] : memref<32x16xf32, #tpu.memory_space<vmem>>, vector<32x16xf32>
    %cst_16 = arith.constant dense<0.000000e+00> : vector<8x16xf32>
    %16 = tpu.matmul %4, %15, %cst_16 {dimension_numbers = #tpu.dot_dimension_numbers<[1], [0], [0], [1], [0, 0, 1, 1], [], []>} : vector<8x32xf32>, vector<32x16xf32>, vector<8x16xf32> -> vector<8x16xf32>
    %c0_17 = arith.constant 0 : index
    %c0_18 = arith.constant 0 : index
    %17 = vector.load %arg9[%c0_17, %c0_18] : memref<1x16xf32, #tpu.memory_space<vmem>>, vector<1x16xf32>
    %18 = vector.broadcast %17 : vector<1x16xf32> to vector<8x16xf32>
    %19 = arith.addf %16, %18 : vector<8x16xf32>
    %20 = vector.shape_cast %19 : vector<8x16xf32> to vector<8x1x16xf32>
    %21 = vector.broadcast %20 : vector<8x1x16xf32> to vector<8x16x16xf32>
    %22 = arith.addf %14, %21 : vector<8x16x16xf32>
    %23 = math.tanh %22 : vector<8x16x16xf32>
    %c0_19 = arith.constant 0 : index
    %c0_20 = arith.constant 0 : index
    %24 = vector.load %arg10[%c0_19, %c0_20] : memref<1x16xf32, #tpu.memory_space<vmem>>, vector<1x16xf32>
    %25 = vector.shape_cast %24 : vector<1x16xf32> to vector<1x1x16xf32>
    %26 = vector.broadcast %25 : vector<1x1x16xf32> to vector<8x16x16xf32>
    %27 = arith.mulf %23, %26 : vector<8x16x16xf32>
    %cst_21 = arith.constant dense<0.000000e+00> : vector<8x16xf32>
    %28 = vector.multi_reduction <add>, %27, %cst_21 [2] : vector<8x16x16xf32> to vector<8x16xf32>
    %c0_22 = arith.constant 0 : index
    %c0_23 = arith.constant 0 : index
    %29 = vector.load %arg11[%c0_22, %c0_23] : memref<1x1xf32, #tpu.memory_space<vmem>>, vector<1x1xf32>
    %30 = vector.broadcast %29 : vector<1x1xf32> to vector<8x16xf32>
    %31 = arith.addf %28, %30 : vector<8x16xf32>
    %cst_24 = arith.constant dense<0xFF800000> : vector<8xf32>
    %32 = vector.multi_reduction <maximumf>, %31, %cst_24 [1] : vector<8x16xf32> to vector<8xf32>
    %33 = vector.shape_cast %32 : vector<8xf32> to vector<8x1xf32>
    %34 = vector.broadcast %33 : vector<8x1xf32> to vector<8x16xf32>
    %35 = arith.subf %31, %34 : vector<8x16xf32>
    %36 = math.exp %35 : vector<8x16xf32>
    %cst_25 = arith.constant dense<0.000000e+00> : vector<8xf32>
    %37 = vector.multi_reduction <add>, %36, %cst_25 [1] : vector<8x16xf32> to vector<8xf32>
    %38 = vector.shape_cast %37 : vector<8xf32> to vector<8x1xf32>
    %39 = tpu.reciprocal %38 {approx = true} : vector<8x1xf32> -> vector<8x1xf32>
    %40 = vector.broadcast %39 : vector<8x1xf32> to vector<8x16xf32>
    %41 = arith.mulf %36, %40 : vector<8x16xf32>
    %42 = vector.shape_cast %41 : vector<8x16xf32> to vector<8x16x1xf32>
    %43 = vector.broadcast %42 : vector<8x16x1xf32> to vector<8x16x32xf32>
    %44 = arith.mulf %3, %43 : vector<8x16x32xf32>
    %cst_26 = arith.constant dense<0.000000e+00> : vector<8x32xf32>
    %45 = vector.multi_reduction <add>, %44, %cst_26 [1] : vector<8x16x32xf32> to vector<8x32xf32>
    %c0_27 = arith.constant 0 : index
    %c0_28 = arith.constant 0 : index
    %46 = vector.load %arg12[%c0_27, %c0_28] : memref<32x32xf32, #tpu.memory_space<vmem>>, vector<32x32xf32>
    %cst_29 = arith.constant dense<0.000000e+00> : vector<8x32xf32>
    %47 = tpu.matmul %4, %46, %cst_29 {dimension_numbers = #tpu.dot_dimension_numbers<[1], [0], [0], [1], [0, 0, 1, 1], [], []>} : vector<8x32xf32>, vector<32x32xf32>, vector<8x32xf32> -> vector<8x32xf32>
    %c0_30 = arith.constant 0 : index
    %c0_31 = arith.constant 0 : index
    %48 = vector.load %arg13[%c0_30, %c0_31] : memref<1x32xf32, #tpu.memory_space<vmem>>, vector<1x32xf32>
    %49 = vector.broadcast %48 : vector<1x32xf32> to vector<8x32xf32>
    %50 = arith.addf %47, %49 : vector<8x32xf32>
    %51 = arith.negf %50 : vector<8x32xf32>
    %52 = math.exp %51 : vector<8x32xf32>
    %cst_32 = arith.constant 1.000000e+00 : f32
    %53 = vector.broadcast %cst_32 : f32 to vector<8x32xf32>
    %54 = arith.addf %53, %52 : vector<8x32xf32>
    %55 = arith.divf %53, %54 : vector<8x32xf32>
    %56 = arith.mulf %55, %45 : vector<8x32xf32>
    %c0_33 = arith.constant 0 : index
    %c0_34 = arith.constant 0 : index
    %57 = vector.load %arg14[%c0_33, %c0_34] : memref<16x128xf32, #tpu.memory_space<vmem>>, vector<16x128xf32>
    %cst_35 = arith.constant dense<0.000000e+00> : vector<8x128xf32>
    %58 = tpu.matmul %7, %57, %cst_35 {dimension_numbers = #tpu.dot_dimension_numbers<[1], [0], [0], [1], [0, 0, 1, 1], [], []>} : vector<8x16xf32>, vector<16x128xf32>, vector<8x128xf32> -> vector<8x128xf32>
    %c0_36 = arith.constant 0 : index
    %c0_37 = arith.constant 0 : index
    %59 = vector.load %arg15[%c0_36, %c0_37] : memref<32x128xf32, #tpu.memory_space<vmem>>, vector<32x128xf32>
    %cst_38 = arith.constant dense<0.000000e+00> : vector<8x128xf32>
    %60 = tpu.matmul %56, %59, %cst_38 {dimension_numbers = #tpu.dot_dimension_numbers<[1], [0], [0], [1], [0, 0, 1, 1], [], []>} : vector<8x32xf32>, vector<32x128xf32>, vector<8x128xf32> -> vector<8x128xf32>
    %61 = arith.addf %58, %60 : vector<8x128xf32>
    %c0_39 = arith.constant 0 : index
    %c0_40 = arith.constant 0 : index
    %62 = vector.load %arg17[%c0_39, %c0_40] : memref<32x128xf32, #tpu.memory_space<vmem>>, vector<32x128xf32>
    %cst_41 = arith.constant dense<0.000000e+00> : vector<8x128xf32>
    %63 = tpu.matmul %4, %62, %cst_41 {dimension_numbers = #tpu.dot_dimension_numbers<[1], [0], [0], [1], [0, 0, 1, 1], [], []>} : vector<8x32xf32>, vector<32x128xf32>, vector<8x128xf32> -> vector<8x128xf32>
    %64 = arith.addf %61, %63 : vector<8x128xf32>
    %c0_42 = arith.constant 0 : index
    %c0_43 = arith.constant 0 : index
    %65 = vector.load %arg16[%c0_42, %c0_43] : memref<1x128xf32, #tpu.memory_space<vmem>>, vector<1x128xf32>
    %66 = vector.broadcast %65 : vector<1x128xf32> to vector<8x128xf32>
    %67 = arith.addf %64, %66 : vector<8x128xf32>
    %c0_44 = arith.constant 0 : index
    %c0_45 = arith.constant 0 : index
    %68 = vector.load %arg18[%c0_44, %c0_45] : memref<1x128xf32, #tpu.memory_space<vmem>>, vector<1x128xf32>
    %69 = vector.broadcast %68 : vector<1x128xf32> to vector<8x128xf32>
    %70 = arith.addf %67, %69 : vector<8x128xf32>
    %71 = vector.extract_strided_slice %70 {offsets = [0, 0], sizes = [8, 32], strides = [1, 1]} : vector<8x128xf32> to vector<8x32xf32>
    %72 = arith.negf %71 : vector<8x32xf32>
    %73 = math.exp %72 : vector<8x32xf32>
    %cst_46 = arith.constant 1.000000e+00 : f32
    %74 = vector.broadcast %cst_46 : f32 to vector<8x32xf32>
    %75 = arith.addf %74, %73 : vector<8x32xf32>
    %76 = arith.divf %74, %75 : vector<8x32xf32>
    %77 = vector.extract_strided_slice %70 {offsets = [0, 32], sizes = [8, 32], strides = [1, 1]} : vector<8x128xf32> to vector<8x32xf32>
    %78 = arith.negf %77 : vector<8x32xf32>
    %79 = math.exp %78 : vector<8x32xf32>
    %cst_47 = arith.constant 1.000000e+00 : f32
    %80 = vector.broadcast %cst_47 : f32 to vector<8x32xf32>
    %81 = arith.addf %80, %79 : vector<8x32xf32>
    %82 = arith.divf %80, %81 : vector<8x32xf32>
    %83 = vector.extract_strided_slice %70 {offsets = [0, 64], sizes = [8, 32], strides = [1, 1]} : vector<8x128xf32> to vector<8x32xf32>
    %84 = math.tanh %83 : vector<8x32xf32>
    %85 = vector.extract_strided_slice %70 {offsets = [0, 96], sizes = [8, 32], strides = [1, 1]} : vector<8x128xf32> to vector<8x32xf32>
    %86 = arith.negf %85 : vector<8x32xf32>
    %87 = math.exp %86 : vector<8x32xf32>
    %cst_48 = arith.constant 1.000000e+00 : f32
    %88 = vector.broadcast %cst_48 : f32 to vector<8x32xf32>
    %89 = arith.addf %88, %87 : vector<8x32xf32>
    %90 = arith.divf %88, %89 : vector<8x32xf32>
    %91 = arith.mulf %82, %5 : vector<8x32xf32>
    %92 = arith.mulf %76, %84 : vector<8x32xf32>
    %93 = arith.addf %91, %92 : vector<8x32xf32>
    %94 = math.tanh %93 : vector<8x32xf32>
    %95 = arith.mulf %90, %94 : vector<8x32xf32>
    %c0_49 = arith.constant 0 : index
    %c0_50 = arith.constant 0 : index
    %96 = vector.load %arg23[%c0_49, %c0_50] : memref<8x32xf32, #tpu.memory_space<vmem>>, vector<8x32xf32>
    tpu.vector_store %arg23[%c0_49, %c0_50], %95 {strides = array<i32>} : memref<8x32xf32, #tpu.memory_space<vmem>>, vector<8x32xf32>,
    %c0_51 = arith.constant 0 : index
    %c0_52 = arith.constant 0 : index
    %97 = vector.load %arg24[%c0_51, %c0_52] : memref<8x32xf32, #tpu.memory_space<vmem>>, vector<8x32xf32>
    tpu.vector_store %arg24[%c0_51, %c0_52], %93 {strides = array<i32>} : memref<8x32xf32, #tpu.memory_space<vmem>>, vector<8x32xf32>,
    %c0_53 = arith.constant 0 : index
    %c0_54 = arith.constant 0 : index
    %98 = vector.load %arg19[%c0_53, %c0_54] : memref<32x128xf32, #tpu.memory_space<vmem>>, vector<32x128xf32>
    %cst_55 = arith.constant dense<0.000000e+00> : vector<8x128xf32>
    %99 = tpu.matmul %95, %98, %cst_55 {dimension_numbers = #tpu.dot_dimension_numbers<[1], [0], [0], [1], [0, 0, 1, 1], [], []>} : vector<8x32xf32>, vector<32x128xf32>, vector<8x128xf32> -> vector<8x128xf32>
    %c0_56 = arith.constant 0 : index
    %c0_57 = arith.constant 0 : index
    %100 = vector.load %arg20[%c0_56, %c0_57] : memref<1x128xf32, #tpu.memory_space<vmem>>, vector<1x128xf32>
    %101 = vector.broadcast %100 : vector<1x128xf32> to vector<8x128xf32>
    %102 = arith.addf %99, %101 : vector<8x128xf32>
    %cst_58 = arith.constant dense<0xFF800000> : vector<8xf32>
    %103 = vector.multi_reduction <maximumf>, %102, %cst_58 [1] : vector<8x128xf32> to vector<8xf32>
    %104 = vector.shape_cast %103 : vector<8xf32> to vector<8x1xf32>
    %105 = vector.broadcast %104 : vector<8x1xf32> to vector<8x128xf32>
    %106 = arith.subf %102, %105 : vector<8x128xf32>
    %107 = math.exp %106 : vector<8x128xf32>
    %cst_59 = arith.constant dense<0.000000e+00> : vector<8xf32>
    %108 = vector.multi_reduction <add>, %107, %cst_59 [1] : vector<8x128xf32> to vector<8xf32>
    %109 = vector.shape_cast %108 : vector<8xf32> to vector<8x1xf32>
    %110 = math.log %109 : vector<8x1xf32>
    %111 = vector.broadcast %110 : vector<8x1xf32> to vector<8x128xf32>
    %112 = arith.subf %106, %111 : vector<8x128xf32>
    %113 = arith.index_cast %arg0 : i32 to index
    %114 = memref.load %arg1[%113] : memref<9xi32, #tpu.memory_space<smem>>
    %115 = tpu.iota {dimensions = array<i32: 0>} : vector<8x1xi32>
    %116 = vector.broadcast %114 : i32 to vector<8x1xi32>
    %117 = arith.cmpi slt, %115, %116 : vector<8x1xi32>
    %cst_60 = arith.constant -3.17805386 : f32
    %118 = vector.shape_cast %117 : vector<8x1xi1> to vector<8x1xi1>
    %119 = vector.broadcast %118 : vector<8x1xi1> to vector<8x128xi1>
    %120 = vector.broadcast %cst_60 : f32 to vector<8x128xf32>
    %121 = arith.select %119, %112, %120 : vector<8x128xi1>, vector<8x128xf32>
    %c0_61 = arith.constant 0 : index
    %c0_62 = arith.constant 0 : index
    %c0_63 = arith.constant 0 : index
    %122 = vector.load %arg21[%c0_61, %c0_62, %c0_63] : memref<1x8x128xf32, #tpu.memory_space<vmem>>, vector<1x8x128xf32>
    %123 = vector.shape_cast %122 : vector<1x8x128xf32> to vector<8x128xf32>
    %124 = vector.shape_cast %121 : vector<8x128xf32> to vector<1x8x128xf32>
    tpu.vector_store %arg21[%c0_61, %c0_62, %c0_63], %124 {strides = array<i32>} : memref<1x8x128xf32, #tpu.memory_space<vmem>>, vector<1x8x128xf32>,
    %cst_64 = arith.constant 0.000000e+00 : f32
    %125 = vector.shape_cast %117 : vector<8x1xi1> to vector<8x1xi1>
    %126 = vector.broadcast %125 : vector<8x1xi1> to vector<8x16xi1>
    %127 = vector.broadcast %cst_64 : f32 to vector<8x16xf32>
    %128 = arith.select %126, %41, %127 : vector<8x16xi1>, vector<8x16xf32>
    %c0_65 = arith.constant 0 : index
    %c0_66 = arith.constant 0 : index
    %c0_67 = arith.constant 0 : index
    %129 = vector.load %arg22[%c0_65, %c0_66, %c0_67] : memref<1x8x16xf32, #tpu.memory_space<vmem>>, vector<1x8x16xf32>
    %130 = vector.shape_cast %129 : vector<1x8x16xf32> to vector<8x16xf32>
    %131 = vector.shape_cast %128 : vector<8x16xf32> to vector<1x8x16xf32>
    tpu.vector_store %arg22[%c0_65, %c0_66, %c0_67], %131 {strides = array<i32>} : memref<1x8x16xf32, #tpu.memory_space<vmem>>, vector<1x8x16xf32>,
    return
  }
  func.func @transform_0(%arg0: i32, %arg1: memref<9xi32, #tpu.memory_space<smem>>) -> (i32, i32, i32) {
    %c0_i32 = arith.constant 0 : i32
    %c0_i32_0 = arith.constant 0 : i32
    %c0_i32_1 = arith.constant 0 : i32
    %c0_i32_2 = arith.constant 0 : i32
    return %c0_i32, %c0_i32_0, %c0_i32_1 : i32, i32, i32
  }
  func.func @transform_1(%arg0: i32, %arg1: memref<9xi32, #tpu.memory_space<smem>>) -> (i32, i32, i32) {
    %c0_i32 = arith.constant 0 : i32
    %c0_i32_0 = arith.constant 0 : i32
    %c0_i32_1 = arith.constant 0 : i32
    return %arg0, %c0_i32, %c0_i32_0 : i32, i32, i32
  }
  func.func @transform_2(%arg0: i32, %arg1: memref<9xi32, #tpu.memory_space<smem>>) -> (i32, i32) {
    %c0_i32 = arith.constant 0 : i32
    %c0_i32_0 = arith.constant 0 : i32
    %c0_i32_1 = arith.constant 0 : i32
    return %c0_i32, %c0_i32_0 : i32, i32
  }
  func.func @transform_3(%arg0: i32, %arg1: memref<9xi32, #tpu.memory_space<smem>>) -> (i32, i32) {
    %c0_i32 = arith.constant 0 : i32
    %c0_i32_0 = arith.constant 0 : i32
    %c0_i32_1 = arith.constant 0 : i32
    return %c0_i32, %c0_i32_0 : i32, i32
  }
  func.func @transform_4(%arg0: i32, %arg1: memref<9xi32, #tpu.memory_space<smem>>) -> (i32, i32) {
    %c0_i32 = arith.constant 0 : i32
    %c0_i32_0 = arith.constant 0 : i32
    %c0_i32_1 = arith.constant 0 : i32
    return %c0_i32, %c0_i32_0 : i32, i32
  }
  func.func @transform_5(%arg0: i32, %arg1: memref<9xi32, #tpu.memory_space<smem>>) -> (i32, i32) {
    %c0_i32 = arith.constant 0 : i32
    %c0_i32_0 = arith.constant 0 : i32
    %c0_i32_1 = arith.constant 0 : i32
    return %c0_i32, %c0_i32_0 : i32, i32
  }
  func.func @transform_6(%arg0: i32, %arg1: memref<9xi32, #tpu.memory_space<smem>>) -> (i32, i32) {
    %c0_i32 = arith.constant 0 : i32
    %c0_i32_0 = arith.constant 0 : i32
    %c0_i32_1 = arith.constant 0 : i32
    return %c0_i32, %c0_i32_0 : i32, i32
  }
  func.func @transform_7(%arg0: i32, %arg1: memref<9xi32, #tpu.memory_space<smem>>) -> (i32, i32) {
    %c0_i32 = arith.constant 0 : i32
    %c0_i32_0 = arith.constant 0 : i32
    %c0_i32_1 = arith.constant 0 : i32
    return %c0_i32, %c0_i32_0 : i32, i32
  }
  func.func @transform_8(%arg0: i32, %arg1: memref<9xi32, #tpu.memory_space<smem>>) -> (i32, i32) {
    %c0_i32 = arith.constant 0 : i32
    %c0_i32_0 = arith.constant 0 : i32
    %c0_i32_1 = arith.constant 0 : i32
    return %c0_i32, %c0_i32_0 : i32, i32
  }
  func.func @transform_9(%arg0: i32, %arg1: memref<9xi32, #tpu.memory_space<smem>>) -> (i32, i32) {
    %c0_i32 = arith.constant 0 : i32
    %c0_i32_0 = arith.constant 0 : i32
    %c0_i32_1 = arith.constant 0 : i32
    return %c0_i32, %c0_i32_0 : i32, i32
  }
  func.func @transform_10(%arg0: i32, %arg1: memref<9xi32, #tpu.memory_space<smem>>) -> (i32, i32) {
    %c0_i32 = arith.constant 0 : i32
    %c0_i32_0 = arith.constant 0 : i32
    %c0_i32_1 = arith.constant 0 : i32
    return %c0_i32, %c0_i32_0 : i32, i32
  }
  func.func @transform_11(%arg0: i32, %arg1: memref<9xi32, #tpu.memory_space<smem>>) -> (i32, i32) {
    %c0_i32 = arith.constant 0 : i32
    %c0_i32_0 = arith.constant 0 : i32
    %c0_i32_1 = arith.constant 0 : i32
    return %c0_i32, %c0_i32_0 : i32, i32
  }
  func.func @transform_12(%arg0: i32, %arg1: memref<9xi32, #tpu.memory_space<smem>>) -> (i32, i32) {
    %c0_i32 = arith.constant 0 : i32
    %c0_i32_0 = arith.constant 0 : i32
    %c0_i32_1 = arith.constant 0 : i32
    return %c0_i32, %c0_i32_0 : i32, i32
  }
  func.func @transform_13(%arg0: i32, %arg1: memref<9xi32, #tpu.memory_space<smem>>) -> (i32, i32) {
    %c0_i32 = arith.constant 0 : i32
    %c0_i32_0 = arith.constant 0 : i32
    %c0_i32_1 = arith.constant 0 : i32
    return %c0_i32, %c0_i32_0 : i32, i32
  }
  func.func @transform_14(%arg0: i32, %arg1: memref<9xi32, #tpu.memory_space<smem>>) -> (i32, i32) {
    %c0_i32 = arith.constant 0 : i32
    %c0_i32_0 = arith.constant 0 : i32
    %c0_i32_1 = arith.constant 0 : i32
    return %c0_i32, %c0_i32_0 : i32, i32
  }
  func.func @transform_15(%arg0: i32, %arg1: memref<9xi32, #tpu.memory_space<smem>>) -> (i32, i32) {
    %c0_i32 = arith.constant 0 : i32
    %c0_i32_0 = arith.constant 0 : i32
    %c0_i32_1 = arith.constant 0 : i32
    return %c0_i32, %c0_i32_0 : i32, i32
  }
  func.func @transform_16(%arg0: i32, %arg1: memref<9xi32, #tpu.memory_space<smem>>) -> (i32, i32) {
    %c0_i32 = arith.constant 0 : i32
    %c0_i32_0 = arith.constant 0 : i32
    %c0_i32_1 = arith.constant 0 : i32
    return %c0_i32, %c0_i32_0 : i32, i32
  }
  func.func @transform_17(%arg0: i32, %arg1: memref<9xi32, #tpu.memory_space<smem>>) -> (i32, i32) {
    %c0_i32 = arith.constant 0 : i32
    %c0_i32_0 = arith.constant 0 : i32
    %c0_i32_1 = arith.constant 0 : i32
    return %c0_i32, %c0_i32_0 : i32, i32
  }
  func.func @transform_18(%arg0: i32, %arg1: memref<9xi32, #tpu.memory_space<smem>>) -> (i32, i32) {
    %c0_i32 = arith.constant 0 : i32
    %c0_i32_0 = arith.constant 0 : i32
    %c0_i32_1 = arith.constant 0 : i32
    return %c0_i32, %c0_i32_0 : i32, i32
  }
  func.func @transform_19(%arg0: i32, %arg1: memref<9xi32, #tpu.memory_space<smem>>) -> (i32, i32, i32) {
    %c0_i32 = arith.constant 0 : i32
    %c0_i32_0 = arith.constant 0 : i32
    %c0_i32_1 = arith.constant 0 : i32
    return %arg0, %c0_i32, %c0_i32_0 : i32, i32, i32
  }
  func.func @transform_20(%arg0: i32, %arg1: memref<9xi32, #tpu.memory_space<smem>>) -> (i32, i32, i32) {
    %c0_i32 = arith.constant 0 : i32
    %c0_i32_0 = arith.constant 0 : i32
    %c0_i32_1 = arith.constant 0 : i32
    return %arg0, %c0_i32, %c0_i32_0 : i32, i32, i32
  }
}

</mosaic_0001>

<bundles_post_ra>
// kernel: tpu_custom_call.1
= control target key start
LH: loop header
LB: loop body
LE: loop exit
PB: predicated region body
PF: predicated region fallthrough
CT: control target
= control target key end

     0   :  { %s4524_s0 = inlined_call_operand.vmem [shape: s32[9], index: 0, kind: input, shape index: {}]   ;;  %s4525_s1 = inlined_call_operand.hbm [shape: f32[8,16,32], index: 1, kind: input, shape index: {}]   ;;  %s4526_s2 = inlined_call_operand.vmem [shape: f32[9,8,16], index: 2, kind: input, shape index: {}]   ;;  %s4527_s3 = inlined_call_operand.hbm [shape: f32[32,64], index: 3, kind: input, shape index: {}]   ;;  %s4528_s4 = inlined_call_operand.hbm [shape: f32[1,64], index: 4, kind: input, shape index: {}]   ;;  %s4529_s5 = inlined_call_operand.vmem [shape: f32[32,16], index: 5, kind: input, shape index: {}]   ;;  %s4530_s6 = inlined_call_operand.vmem [shape: f32[1,16], index: 6, kind: input, shape index: {}]   ;;  %s4531_s7 = inlined_call_operand.vmem [shape: f32[32,16], index: 7, kind: input, shape index: {}]   ;;  %s4532_s8 = inlined_call_operand.vmem [shape: f32[1,16], index: 8, kind: input, shape index: {}]   ;;  %s4533_s9 = inlined_call_operand.vmem [shape: f32[1,16], index: 9, kind: input, shape index: {}]   ;;  %s4534_s11 = inlined_call_operand.vmem [shape: f32[32,32], index: 11, kind: input, shape index: {}]   ;;  %s4535_s12 = inlined_call_operand.vmem [shape: f32[1,32], index: 12, kind: input, shape index: {}]   ;;  %s4536_s13 = inlined_call_operand.hbm [shape: f32[16,128], index: 13, kind: input, shape index: {}]   ;;  %s4537_s14 = inlined_call_operand.hbm [shape: f32[32,128], index: 14, kind: input, shape index: {}]   ;;  %s4538_s15 = inlined_call_operand.vmem [shape: f32[1,128], index: 15, kind: input, shape index: {}]   ;;  %s4539_s16 = inlined_call_operand.hbm [shape: f32[32,128], index: 16, kind: input, shape index: {}]   ;;  %s4540_s17 = inlined_call_operand.vmem [shape: f32[1,128], index: 17, kind: input, shape index: {}]   ;;  %s4541_s18 = inlined_call_operand.hbm [shape: f32[32,128], index: 18, kind: input, shape index: {}]   ;;  %s4542_s19 = inlined_call_operand.vmem [shape: f32[1,128], index: 19, kind: input, shape index: {}]   ;;  %s4543_s20 = inlined_call_operand.hbm [shape: f32[9,8,128], index: 20, kind: output, shape index: {0}]   ;;  %s4544_s21 = inlined_call_operand.hbm [shape: f32[9,8,16], index: 21, kind: output, shape index: {1}]   ;;  %s4545_s10 = inlined_call_operand.<no memory space> [shape: f32[1,1], index: 10, kind: input, shape index: {}]  }
   0x1   :  { %4557 = sst [smem:[#allocation35_spill]] %s4524_s0  ;;  %v31_v0 = vstv %s4545_s10 }
   0x2   :  { %4558 = sst [smem:[#allocation36_spill]] %s4525_s1  ;;  %32 = vst [vmem:[#allocation6] sm:$0x1] %v31_v0 }
   0x3   :  { %4559 = sst [smem:[#allocation37_spill]] %s4526_s2 }
   0x4   :  { %4560 = sst [smem:[#allocation38_spill]] %s4527_s3 }
   0x5   :  { %4561 = sst [smem:[#allocation39_spill]] %s4528_s4 }
   0x6   :  { %4562 = sst [smem:[#allocation40_spill]] %s4529_s5 }
   0x7   :  { %4563 = sst [smem:[#allocation41_spill]] %s4530_s6 }
   0x8   :  { %4564 = sst [smem:[#allocation42_spill]] %s4536_s13 }
   0x9   :  { %4565 = sst [smem:[#allocation43_spill]] %s4538_s15 }
   0xa   :  { %s4566_s26 = sld [smem:[#allocation35_spill]] }
  0x10   :  { %s27_s15 = sshll.u32 %s4566_s26, 4  ;;  %s28_s15 = int_to_ptr.vmem [resolvable:$true] %s27_s15 }
  0x11   :  { %s3265_s28 = scalar_lea.vmem %s28_s15, 16  ;;  %p3270_p1 = scmp.lt.s32.totalorder %s28_s15, %s28_s15 }
  0x12   :  { %p3266_p0 = scmp.ne.s32.totalorder %s28_s15, %s3265_s28  ;;  %p3271_p2 = scmp.lt.s32.totalorder %s3265_s28, %s3265_s28 }
  0x14   :  { %p3272_p3 = por %p3271_p2, %p3270_p1 }
  0x16   :  { %p3273_p4 = pnand %p3272_p3, %p3266_p0 }
  0x18   :  { %3276 = shalt.err (!%p3273_p4)  }
  0x19   :  { %s3569_s29 = smov [#allocation5]  }
  0x1a   :  { %30 = dma.vmem_to_smem %s28_s15, 16, %s3569_s29, [#allocation4] }
  0x1b   :  { %3527 = dma.done.wait [#allocation4], 16 }
  0x1c   :  { %3528 = vsyncadd [#allocation4], 4294967280 }
  0x1d   :  { %34 = sfence }
  0x1e   :  { %35 = vsyncpa [#allocation8], 0 }
  0x1f   :  { %36 = vsyncpa [#allocation11], 0 }
  0x20   :  { %37 = vsyncpa [#allocation14], 0 }
  0x21   :  { %38 = vsyncpa [#allocation17], 0 }
  0x22   :  { %39 = vsyncpa [#allocation9], 0 }
  0x23   :  { %41 = vsyncpa [#allocation9 + $0x1], 0 }
  0x24   :  { %42 = vsyncpa [#allocation21], 0 }
  0x25   :  { %44 = vsyncpa [#allocation21 + $0x1], 0  ;;  %s3707_s10 = smov 0   ;;  %s3709_s0 = smov 0  }
  0x26   :  { %s3711_s4 = smov 0   ;;  %s3713_s30 = smov 0  }
  0x27 LB: > { %4567 = sst [smem:[#allocation29_spill]] %s3555_s10  ;;  %s3728_s15 = sadd.s32 4294967295, %s3567_s30   ;;  %s3567_s30 = sphi %s3713_s30, %s4602_s30   ;;  %s3563_s4 = sphi %s3711_s4, %s4604_s4   ;;  %s3559_s0 = sphi %s3709_s0, %s4606_s0   ;;  %s3555_s10 = sphi %s3707_s10, %s4605_s10  }
  0x28   : > { %4568 = sst [smem:[#allocation30_spill]] %s3563_s4  ;;  %s2819_s5 = sadd.s32 4294967294, %s3567_s30  }
  0x29   : > { %4569 = sst [smem:[#allocation31_spill]] %s3567_s30  ;;  %s3732_s22 = sadd.s32 1, %s3567_s30  }
  0x2a   : > { %4570 = sst [smem:[#allocation32_spill]] %s3732_s22  ;;  %s461_s23 = sadd.s32 1, %s3563_s4 }
  0x2b   : > { %s458_s1 = ssub.s32 %s3567_s30, %s3732_s22  ;;  %p471_p5 = scmp.ne.s32.totalorder %s3563_s4, %s3559_s0 }
  0x2c   : > { %p459_p6 = scmp.eq.s32.totalorder %s458_s1, 0  ;;  %p472_p7 = scmp.eq.s32.totalorder %s3728_s15, 8 }
  0x2d   : > { %p477_p8 = scmp.ne.s32.totalorder %s3559_s0, %s3555_s10  ;;  %p478_p9 = scmp.eq.s32.totalorder %s2819_s5, 8 }
  0x2e   : > { %s3743_s24 = scalar_select %p459_p6, %s3563_s4, %s461_s23  }
  0x2f   : > { %p3745_p10 = por %p472_p7, %p471_p5  ;;  %p3749_p11 = por %p478_p9, %p477_p8 }
  0x30   : > { %4571 = sst [smem:[#allocation33_spill]] %s3743_s24  ;;  %p2820_p12 = scmp.ge.s32.totalorder %s3567_s30, 1 }
  0x31   : > { %s4573_s25 = scalar_select %p3749_p11, 1, 0 }
  0x32   : > { %p511_p13 = scmp.lt.s32.totalorder %s3567_s30, 10  ;;  %p4553_p1 = scmp.eq.s32.totalorder %s3728_s15, 0 }
  0x33   : > { %4574 = sst [smem:[#allocation34_spill]] %s4573_s25  ;;  %s3570_s27 = smov [#allocation10]  }
  0x34   : > { %p3757_p2 = pnand %p2820_p12, %p511_p13  ;;  %s536_s3 = sshll.u32 %s3570_s27, 4  ;;  %s537_s3 = int_to_ptr.vmem [resolvable:$true] %s536_s3 }
  0x35   : > { %s3571_s29 = smov [#allocation13]   ;;  %s3572_s23 = smov [#allocation16]  }
  0x36   : > { %p3071_p3 = pneg %p3757_p2  ;;  %s584_s5 = sshll.u32 %s3571_s29, 4  ;;  %s585_s5 = int_to_ptr.vmem [resolvable:$true] %s584_s5 }
  0x37   : > { %s613_s1 = sshll.u32 %s3572_s23, 4  ;;  %s3288_s4 = scalar_lea.vmem %s537_s3, 512  ;;  %s614_s1 = int_to_ptr.vmem [resolvable:$true] %s613_s1 }
  0x38   : > { %p3765_p4 = pnand %p4553_p1, %p3071_p3  ;;  %p3289_p6 = scmp.ne.s32.totalorder %s537_s3, %s3288_s4 }
  0x39   : > { %p3296_p9 = scmp.lt.s32.totalorder %s537_s3, %s537_s3  ;;  %p3297_p12 = scmp.lt.s32.totalorder %s3288_s4, %s3288_s4 }
  0x3a   : > { %p3771_p5 = pneg %p3765_p4 }
  0x3b   : > { %p3298_p13 = por %p3297_p12, %p3296_p9 }
  0x3c   : > { %p3291_p7 = pnand %p3289_p6, %p3771_p5 }
  0x3e   : > { %p3292_p8 = pneg %p3291_p7 }
  0x40   : > { %p3299_p3 = pnand %p3298_p13, %p3292_p8 }
  0x42   : > { %3302 = shalt.err (!%p3299_p3)
}
  0x43   : > { %s4554_s27 = smov 128   ;;  %s3574_s29 = smov 8  }
  0x44   : > { %s4578_s25 = sld [smem:[#allocation38_spill]]  ;;  %s3314_s10 = scalar_lea.vmem %s585_s5, 256 }
  0x45   : > { %p3315_p6 = scmp.ne.s32.totalorder %s585_s5, %s3314_s10  ;;  %p3322_p9 = scmp.lt.s32.totalorder %s585_s5, %s585_s5 }
  0x46   : > { %p3323_p8 = scmp.lt.s32.totalorder %s3314_s10, %s3314_s10 }
  0x47   : > { %p3317_p7 = pnand %p3315_p6, %p3771_p5 }
  0x48   : > { %p3324_p12 = por %p3323_p8, %p3322_p9 }
  0x49   : > { %p3318_p0 = pneg %p3317_p7 }
  0x4a   : > { %3077 = dma.hbm_to_vmem [thread:$0]  (!%p3765_p4), %s4578_s25, 512, %s537_s3, [#allocation11], %s4554_s27, %s4554_s27, %s3574_s29  }
  0x4b   : > { %p3325_p13 = pnand %p3324_p12, %p3318_p0 }
  0x4d   : > { %3328 = shalt.err (!%p3325_p13)
}
  0x4e   : > { %s4579_s13 = sld [smem:[#allocation42_spill]]  ;;  %s3340_s22 = scalar_lea.vmem %s614_s1, 512 }
  0x4f   : > { %p3341_p3 = scmp.ne.s32.totalorder %s614_s1, %s3340_s22  ;;  %p3348_p1 = scmp.lt.s32.totalorder %s614_s1, %s614_s1 }
  0x50   : > { %p3349_p9 = scmp.lt.s32.totalorder %s3340_s22, %s3340_s22 }
  0x51   : > { %p3343_p6 = pnand %p3341_p3, %p3771_p5 }
  0x52   : > { %p3350_p0 = por %p3349_p9, %p3348_p1 }
  0x53   : > { %p3344_p7 = pneg %p3343_p6 }
  0x54   : > { %3083 = dma.hbm_to_vmem [thread:$0]  (!%p3765_p4), %s4579_s13, 256, %s585_s5, [#allocation14], %s4554_s27, %s4554_s27, %s3574_s29  }
  0x55   : > { %p3351_p8 = pnand %p3350_p0, %p3344_p7 }
  0x57   : > { %3354 = shalt.err (!%p3351_p8)
}
  0x58   : > { %3089 = dma.hbm_to_vmem [thread:$0]  (!%p3765_p4), %s4539_s16, 512, %s614_s1, [#allocation17], %s4554_s27, %s4554_s27, %s3574_s29  }
  0x59   : > { %s3575_s25 = smov [#allocation7]   ;;  %s3576_s5 = smov [#allocation12]  }
  0x5a   : > { %s523_s3 = sshll.u32 %s3575_s25, 4  ;;  %s550_s23 = sshll.u32 %s3576_s5, 4  ;;  %s524_s3 = int_to_ptr.vmem [resolvable:$true] %s523_s3  ;;  %s551_s23 = int_to_ptr.vmem [resolvable:$true] %s550_s23 }
  0x5b   : > { %s3366_s4 = scalar_lea.vmem %s524_s3, 2048  ;;  %p3374_p3 = scmp.lt.s32.totalorder %s524_s3, %s524_s3 }
  0x5c   : > { %p3367_p12 = scmp.ne.s32.totalorder %s524_s3, %s3366_s4  ;;  %p3375_p6 = scmp.lt.s32.totalorder %s3366_s4, %s3366_s4 }
  0x5e   : > { %p3369_p1 = pnand %p3367_p12, %p3771_p5  ;;  %p3376_p7 = por %p3375_p6, %p3374_p3 }
  0x60   : > { %p3370_p13 = pneg %p3369_p1 }
  0x62   : > { %p3377_p9 = pnand %p3376_p7, %p3370_p13 }
  0x64   : > { %3380 = shalt.err (!%p3377_p9)
}
  0x65   : > { %s4580_s10 = sld [smem:[#allocation36_spill]]  ;;  %s3392_s30 = scalar_lea.vmem %s551_s23, 16 }
  0x66   : > { %p3393_p0 = scmp.ne.s32.totalorder %s551_s23, %s3392_s30  ;;  %s3399_s25 = scalar_lea.vmem %s551_s23, 32 }
  0x67   : > { %p3400_p1 = scmp.lt.s32.totalorder %s551_s23, %s551_s23  ;;  %p3401_p13 = scmp.lt.s32.totalorder %s3399_s25, %s3392_s30 }
  0x68   : > { %p3395_p8 = pnand %p3393_p0, %p3771_p5 }
  0x69   : > { %p3402_p3 = por %p3401_p13, %p3400_p1 }
  0x6a   : > { %p3396_p12 = pneg %p3395_p8 }
  0x6b   : > { %3074 = dma.hbm_to_vmem [thread:$0]  (!%p3765_p4), %s4580_s10, 2048, %s524_s3, [#allocation8], %s4554_s27, %s4554_s27, %s3574_s29  }
  0x6c   : > { %p3403_p6 = pnand %p3402_p3, %p3396_p12 }
  0x6e   : > { %3406 = shalt.err (!%p3403_p6)
}
  0x6f   : > { %s4581_s13 = sld [smem:[#allocation39_spill]]  ;;  %s3577_s3 = smov [#allocation15]  }
  0x70   : > { %s597_s1 = sshll.u32 %s3577_s3, 4  ;;  %s3578_s22 = smov [#allocation18]   ;;  %s598_s1 = int_to_ptr.vmem [resolvable:$true] %s597_s1 }
  0x71   : > { %s629_s10 = sshll.u32 %s3578_s22, 4  ;;  %s3418_s27 = scalar_lea.vmem %s598_s1, 512  ;;  %s630_s10 = int_to_ptr.vmem [resolvable:$true] %s629_s10 }
  0x72   : > { %p3419_p7 = scmp.ne.s32.totalorder %s598_s1, %s3418_s27  ;;  %p3426_p8 = scmp.lt.s32.totalorder %s598_s1, %s598_s1 }
  0x73   : > { %p3427_p12 = scmp.lt.s32.totalorder %s3418_s27, %s3418_s27 }
  0x74   : > { %p3421_p9 = pnand %p3419_p7, %p3771_p5 }
  0x75   : > { %3080 = dma.hbm_to_vmem [thread:$0]  (!%p3765_p4), %s4581_s13, 16, %s551_s23, [#allocation11]  }
  0x76   : > { %p3422_p0 = pneg %p3421_p9  ;;  %p3428_p1 = por %p3427_p12, %p3426_p8 }
  0x78   : > { %p3429_p13 = pnand %p3428_p1, %p3422_p0 }
  0x7a   : > { %3432 = shalt.err (!%p3429_p13)
}
  0x7b   : > { %s4582_s30 = smov 128   ;;  %s3444_s25 = scalar_lea.vmem %s630_s10, 512 }
  0x7c   : > { %3086 = dma.hbm_to_vmem [thread:$0]  (!%p3765_p4), %s4537_s14, 512, %s598_s1, [#allocation14], %s4582_s30, %s4582_s30, %s3574_s29  }
  0x7d   : > { %p3445_p3 = scmp.ne.s32.totalorder %s630_s10, %s3444_s25  ;;  %p3452_p9 = scmp.lt.s32.totalorder %s630_s10, %s630_s10 }
  0x7e   : > { %p3453_p8 = scmp.lt.s32.totalorder %s3444_s25, %s3444_s25 }
  0x7f   : > { %p3447_p6 = pnand %p3445_p3, %p3771_p5 }
  0x80   : > { %p3454_p0 = por %p3453_p8, %p3452_p9 }
  0x81   : > { %p3448_p7 = pneg %p3447_p6 }
  0x83   : > { %p3455_p12 = pnand %p3454_p0, %p3448_p7 }
  0x85   : > { %3458 = shalt.err (!%p3455_p12)
}
  0x86   : > { %3092 = dma.hbm_to_vmem [thread:$0]  (!%p3765_p4), %s4541_s18, 512, %s630_s10, [#allocation17], %s4582_s30, %s4582_s30, %s3574_s29  }
  0x87   : > { %655 = sbr.rel (%p3757_p2) target bundleno = 2830 (0xb0e), region = 96  ;;  %p4583_p5 = scmp.eq.s32.totalorder (!%p3757_p2), %s3728_s15, 0 }
  0x8c   : > { %3530 = dma.done.wait (%p4583_p5), [#allocation8], 2048   ;;  %p4584_p1 = pmov %p4583_p5 }
  0x8e   : > { %3532 = vsyncadd (%p4584_p1), [#allocation8], 4294965248  ;;  %p4585_p13 = pmov %p4584_p1 }
  0x8f   : > { %p4586_p3 = pmov %p4584_p1 }
  0x90   : > { %3534 = dma.done.wait (%p4585_p13), [#allocation11], 528  }
  0x91   : > { %3536 = vsyncadd (%p4586_p3), [#allocation11], 4294966768  ;;  %p4587_p6 = pmov %p4584_p1 }
  0x92   : > { %p4588_p4 = pmov %p4584_p1 }
  0x93   : > { %3538 = dma.done.wait (%p4587_p6), [#allocation14], 768  }
  0x94   : > { %3540 = vsyncadd (%p4588_p4), [#allocation14], 4294966528  ;;  %p4589_p2 = pmov %p4584_p1 }
  0x95   : > { %p4590_p7 = pmov %p4584_p1 }
  0x96   : > { %3542 = dma.done.wait (%p4589_p2), [#allocation17], 1024  }
  0x97   : > { %3544 = vsyncadd (%p4590_p7), [#allocation17], 4294966272  ;;  %s3861_s24 = sand.u32 1, %s3559_s0   ;;  %p741_p9 = scmp.lt.s32.totalorder %s3728_s15, 8 }
  0x98   : > { %s2837_s26 = sshll.u32 %s3861_s24, 3  ;;  %s4591_s1 = sld [smem:[#allocation37_spill]] }
  0x99   : > { %s742_s28 = scalar_select %p741_p9, %s3728_s15, 8 }
  0x9a   : > { %s3871_s10 = scalar_lea.vmem [#allocation19], %s2837_s26  ;;  %s3873_s30 = scalar_lea.vmem [#allocation20], %s2837_s26 }
  0x9b   : > { %s2839_s29 = sshll.u32 %s742_s28, 3  ;;  %p4592_p8 = scmp.ne.s32.totalorder %s3728_s15, 0 }
  0x9c   : > { %s3581_s13 = smov (!%p4592_p8), 96  }
  0x9d   : > { %748 = sbr.rel (%p4592_p8) target bundleno = 504 (0x1f8), region = 128 }
  0x9e   : > { %s3869_s22 = scalar_lea.vmem %s4591_s1, %s2839_s29 }
  0xa2   : > { %v850_v1 = vld [vmem:[#allocation10 + $0x18] sm:$0xff]  ;;  %v849_v2 = vld [vmem:[#allocation10 + $0x10] sm:$0xff]  ;;  %vm765_vm0 = vcmask 261120   ;;  %v3579_v3 = vmov 0.0   ;;  %v848_v4 = vld [vmem:[#allocation10 + $0x8] sm:$0xff]  ;;  %vm3580_vm1 = vmmov 0  }
  0xa3   : > { %2934 = vmatprep.subr.mxu0 %v3579_v3  ;;  %2942 = vmatprep.mubr.msk.f32.mxu0 %vm3580_vm1, %v3579_v3  ;;  %v749_v5 = vld [vmem:[#allocation7] sm:$0xff]  ;;  %v750_v6 = vld [vmem:[#allocation7 + $0x8] sm:$0xff]  ;;  %v751_v7 = vld [vmem:[#allocation7 + $0x10] sm:$0xff]  ;;  %vm866_vm2 = vcmask 1041409   ;;  %vm868_vm3 = vcmask 1042434   ;;  %vm870_vm4 = vcmask 1043459  }
  0xa4   : > { %2935 = vmatpush3.msra.mxu0 %v850_v1  ;;  %v752_v8 = vld [vmem:[#allocation7 + $0x18] sm:$0xff]  ;;  %v753_v9 = vld [vmem:[#allocation7 + $0x20] sm:$0xff]  ;;  %v766_v10 = vsel %vm765_vm0, %v749_v5, 0.0  ;;  %v767_v11 = vsel %vm765_vm0, %v750_v6, 0.0  ;;  %v754_v13 = vld [vmem:[#allocation7 + $0x28] sm:$0xff]  ;;  %v775_v17 = vsel %vm765_vm0, %v751_v7, 0.0 }
  0xa5   : > { %2936 = vmatprep.subr.mxu0 %v3579_v3  ;;  %v847_v12 = vld [vmem:[#allocation10] sm:$0xff]  ;;  %v755_v14 = vld [vmem:[#allocation7 + $0x30] sm:$0xff]  ;;  %v756_v15 = vld [vmem:[#allocation7 + $0x38] sm:$0xff]  ;;  %v768_v16 = vadd.f32 %v767_v11, %v766_v10  ;;  %v776_v18 = vsel %vm765_vm0, %v752_v8, 0.0  ;;  %v784_v19 = vsel %vm765_vm0, %v753_v9, 0.0  ;;  %v785_v24 = vsel %vm765_vm0, %v754_v13, 0.0 }
  0xa6   : > { %2937 = vmatpush3.msra.mxu0 %v849_v2  ;;  %v757_v20 = vld [vmem:[#allocation7 + $0x40] sm:$0xff]  ;;  %v758_v21 = vld [vmem:[#allocation7 + $0x48] sm:$0xff]  ;;  %v759_v22 = vld [vmem:[#allocation7 + $0x50] sm:$0xff]  ;;  %v777_v23 = vadd.f32 %v776_v18, %v775_v17  ;;  %v793_v25 = vsel %vm765_vm0, %v755_v14, 0.0  ;;  %v794_v26 = vsel %vm765_vm0, %v756_v15, 0.0  ;;  %v786_v31 = vadd.f32 %v785_v24, %v784_v19 }
  0xa7   : > { %2938 = vmatprep.subr.mxu0 %v3579_v3  ;;  %v760_v27 = vld [vmem:[#allocation7 + $0x58] sm:$0xff]  ;;  %v761_v28 = vld [vmem:[#allocation7 + $0x60] sm:$0xff]  ;;  %v762_v29 = vld [vmem:[#allocation7 + $0x68] sm:$0xff]  ;;  %v769_v30 = vrot.slane %v768_v16, 4  ;;  %v795_v32 = vadd.f32 %v794_v26, %v793_v25  ;;  %v802_v33 = vsel %vm765_vm0, %v757_v20, 0.0  ;;  %v803_v35 = vsel %vm765_vm0, %v758_v21, 0.0 }
  0xa8   : > { %2939 = vmatpush3.msra.mxu0 %v848_v4  ;;  %v778_v34 = vrot.slane %v777_v23, 4  ;;  %v811_v36 = vsel %vm765_vm0, %v759_v22, 0.0  ;;  %v812_v37 = vsel %vm765_vm0, %v760_v27, 0.0  ;;  %v763_v38 = vld [vmem:[#allocation7 + $0x70] sm:$0xff]  ;;  %v787_v40 = vrot.slane %v786_v31, 4  ;;  %v764_v47 = vld [vmem:[#allocation7 + $0x78] sm:$0xff] }
  0xa9   : > { %2940 = vmatprep.subr.mxu0 %v3579_v3  ;;  %v770_v39 = vadd.f32 %v769_v30, %v768_v16  ;;  %v796_v41 = vrot.slane %v795_v32, 4  ;;  %v804_v42 = vadd.f32 %v803_v35, %v802_v33  ;;  %v813_v44 = vadd.f32 %v812_v37, %v811_v36 }
  0xaa   : > { %2941 = vmatpush3.msra.mxu0 %v847_v12  ;;  %v779_v43 = vadd.f32 %v778_v34, %v777_v23  ;;  %v820_v45 = vsel %vm765_vm0, %v761_v28, 0.0  ;;  %v821_v46 = vsel %vm765_vm0, %v762_v29, 0.0  ;;  %v788_v49 = vadd.f32 %v787_v40, %v786_v31 }
  0xab   : > { %v771_v48 = vrot.slane %v770_v39, 2  ;;  %v797_v50 = vadd.f32 %v796_v41, %v795_v32  ;;  %v805_v51 = vrot.slane %v804_v42, 4  ;;  %v814_v53 = vrot.slane %v813_v44, 4 }
  0xac   : > { %v780_v52 = vrot.slane %v779_v43, 2  ;;  %v822_v54 = vadd.f32 %v821_v46, %v820_v45  ;;  %v829_v55 = vsel %vm765_vm0, %v763_v38, 0.0  ;;  %v789_v57 = vrot.slane %v788_v49, 2  ;;  %v2841_v45 = vld [vmem:[#allocation12] ss:$0 sm:$0xff] }
  0xad   : > { %v772_v56 = vadd.f32 %v771_v48, %v770_v39  ;;  %v798_v58 = vrot.slane %v797_v50, 2  ;;  %v806_v59 = vadd.f32 %v805_v51, %v804_v42  ;;  %v815_v61 = vadd.f32 %v814_v53, %v813_v44 }
  0xae   : > { %v781_v60 = vadd.f32 %v780_v52, %v779_v43  ;;  %v823_v62 = vrot.slane %v822_v54, 4  ;;  %v830_v63 = vsel %vm765_vm0, %v764_v47, 0.0  ;;  %v790_v1 = vadd.f32 %v789_v57, %v788_v49 }
  0xaf   : > { %v773_v0 = vrot.slane %v772_v56, 1  ;;  %v799_v2 = vadd.f32 %v798_v58, %v797_v50  ;;  %v807_v3 = vrot.slane %v806_v59, 2  ;;  %v816_v5 = vrot.slane %v815_v61, 2 }
  0xb0   : > { %v782_v4 = vrot.slane %v781_v60, 1  ;;  %v824_v6 = vadd.f32 %v823_v62, %v822_v54  ;;  %v831_v7 = vadd.f32 %v830_v63, %v829_v55  ;;  %v791_v9 = vrot.slane %v790_v1, 1 }
  0xb1   : > { %v774_v8 = vadd.f32 %v773_v0, %v772_v56  ;;  %v800_v10 = vrot.slane %v799_v2, 1  ;;  %v808_v11 = vadd.f32 %v807_v3, %v806_v59  ;;  %v817_v13 = vadd.f32 %v816_v5, %v815_v61 }
  0xb2   : > { %v783_v12 = vadd.f32 %v782_v4, %v781_v60  ;;  %v825_v14 = vrot.slane %v824_v6, 2  ;;  %v832_v15 = vrot.slane %v831_v7, 4  ;;  %v792_v16 = vadd.f32 %v791_v9, %v790_v1 }
  0xb3   : > { %v801_v17 = vadd.f32 %v800_v10, %v799_v2  ;;  %v809_v18 = vrot.slane %v808_v11, 1  ;;  %v839_v19 = vmul.f32 0.0625, %v774_v8  ;;  %v818_v20 = vrot.slane %v817_v13, 1 }
  0xb4   : > { %v826_v21 = vadd.f32 %v825_v14, %v824_v6  ;;  %v833_v22 = vadd.f32 %v832_v15, %v831_v7  ;;  %v840_v23 = vmul.f32 0.0625, %v783_v12  ;;  %v841_v25 = vmul.f32 0.0625, %v792_v16 }
  0xb5   : > { %v810_v24 = vadd.f32 %v809_v18, %v808_v11  ;;  %v842_v26 = vmul.f32 0.0625, %v801_v17  ;;  %vm872_vm5 = vcmask 1044484   ;;  %v819_v27 = vadd.f32 %v818_v20, %v817_v13 }
  0xb6   : > { %v827_v28 = vrot.slane %v826_v21, 1  ;;  %v834_v29 = vrot.slane %v833_v22, 2  ;;  %v867_v30 = vsel %vm866_vm2, %v840_v23, %v839_v19  ;;  %vm874_vm6 = vcmask 1045509  }
  0xb7   : > { %v843_v31 = vmul.f32 0.0625, %v810_v24  ;;  %v869_v32 = vsel %vm868_vm3, %v841_v25, %v867_v30  ;;  %v844_v35 = vmul.f32 0.0625, %v819_v27  ;;  %vm876_vm7 = vcmask 1046534  }
  0xb8   : > { %v828_v33 = vadd.f32 %v827_v28, %v826_v21  ;;  %v835_v34 = vadd.f32 %v834_v29, %v833_v22  ;;  %v871_v36 = vsel %vm870_vm4, %v842_v26, %v869_v32  ;;  %vm878_vm8 = vcmask 1047559  }
  0xb9   : > { %v873_v37 = vsel %vm872_vm5, %v843_v31, %v871_v36 }
  0xba   : > { %v836_v38 = vrot.slane %v835_v34, 1  ;;  %v845_v39 = vmul.f32 0.0625, %v828_v33  ;;  %v875_v40 = vsel %vm874_vm6, %v844_v35, %v873_v37 }
  0xbc   : > { %v837_v41 = vadd.f32 %v836_v38, %v835_v34  ;;  %v877_v42 = vsel %vm876_vm7, %v845_v39, %v875_v40 }
  0xbe   : > { %v846_v43 = vmul.f32 0.0625, %v837_v41 }
  0xc0   : > { %v879_v44 = vsel %vm878_vm8, %v846_v43, %v877_v42 }
  0xc1   : > { %2943 = vmatmul.mubr.msk.f32.vlgmr.msra.gmra.mxu0 %vm765_vm0, %v879_v44 }
 0x181   : > { %v948_v46 = vpop.f32.mrf.mxu0 }
 0x182   : > { %v949_v47 = vadd.f32 %v2841_v45, %v948_v46 }
 0x183   : > { %v2944_v48 = vpop.f32.mrf.mxu0 }
 0x184   : > { %952 = vst.msk [vmem:[#allocation2] sm:$0xff] %vm765_vm0, %v949_v47  ;;  %954 = vrot.lane.b32.xlu0 %v949_v47, %s3581_s13 }
 0x1f6   : > { %v955_v49 = vpop.permute.xlu0 %954 }
 0x1f7   : > { %957 = vst.msk [vmem:[#allocation3] sm:$0xff] %vm765_vm0, %v955_v49 }
 0x1f8 PF: > { %s4593_s27 = sld [smem:[#allocation40_spill]]  ;;  %v1185_v51 = vld [vmem:[%s4531_s7 + $0x18] sm:$0xff]  ;;  %v3582_v53 = vmov 0.0   ;;  %v1184_v54 = vld [vmem:[%s4531_s7 + $0x10] sm:$0xff]  ;;  %v1183_v56 = vld [vmem:[%s4531_s7 + $0x8] sm:$0xff]  ;;  %vm988_vm9 = vcmask 261120   ;;  %v1271_v15 = vlaneseq }
 0x1f9   : > { %2977 = vmatprep.subr.mxu1 %v3582_v53  ;;  %v958_v58 = vld [vmem:[#allocation7] sm:$0xff]  ;;  %v1182_v59 = vld [vmem:[%s4531_s7] sm:$0xff]  ;;  %vm3583_vm10 = vmmov 0   ;;  %v3936_v63 = vld [vmem:[#allocation7 + $0x18] sm:$0xff]  ;;  %v3584_v12 = vmov 0   ;;  %s4594_s6 = sld [smem:[#allocation41_spill]] }
 0x1fa   : > { %2978 = vmatpush3.msra.mxu1 %v1185_v51  ;;  %v959_v60 = vld [vmem:[#allocation7 + $0x8] sm:$0xff]  ;;  %2953 = vmatprep.mubr.msk.f32.mxu0 %vm988_vm9, %v958_v58  ;;  %v960_v62 = vld [vmem:[#allocation7 + $0x10] sm:$0xff]  ;;  %v962_v0 = vld [vmem:[#allocation7 + $0x20] sm:$0xff]  ;;  %v3585_v13 = vmov 1966171168   ;;  %v3965_v17 = vshrl.u32 %v1271_v15, 7 }
 0x1fb   : > { %2979 = vmatprep.subr.mxu1 %v3582_v53  ;;  %v3927_v61 = vld [vmem:[#allocation2] sm:$0xff]  ;;  %2985 = vmatprep.mubr.msk.f32.mxu1 %vm3583_vm10, %v3582_v53  ;;  %v3950_v3 = vld [vmem:[#allocation7 + $0x38] sm:$0xff]  ;;  %v966_v4 = vld [vmem:[#allocation7 + $0x40] sm:$0xff]  ;;  %v1269_v14 = vunpack.c.l.s4 %v3585_v13  ;;  %vm1411_vm11 = vcmask 130048   ;;  %vm1513_vm12 = vcmask 130112   ;;  %vm1578_vm13 = vcmask 1041409  }
 0x1fc   : > { %2980 = vmatpush3.msra.mxu1 %v1184_v54  ;;  %v3945_v1 = vld [vmem:[#allocation7 + $0x28] sm:$0xff]  ;;  %v964_v2 = vld [vmem:[#allocation7 + $0x30] sm:$0xff]  ;;  %v969_v7 = vld [vmem:[#allocation7 + $0x58] sm:$0xff]  ;;  %3167 = vset.pattern.permute.xlu0 %v3584_v12  ;;  %v3977_v27 = vsub.s32 0, %v3965_v17  ;;  %vm1580_vm14 = vcmask 1042434   ;;  %vm1582_vm15 = vcmask 1043459  }
 0x1fd   : > { %2981 = vmatprep.subr.mxu1 %v3582_v53  ;;  %v967_v5 = vld [vmem:[#allocation7 + $0x48] sm:$0xff]  ;;  %v968_v6 = vld [vmem:[#allocation7 + $0x50] sm:$0xff]  ;;  %v970_v8 = vld [vmem:[#allocation7 + $0x60] sm:$0xff]  ;;  %3168 = vset.pattern.permute.xlu1 %v3584_v12  ;;  %v1270_v16 = vunpack.c.0.s8 %v1269_v14  ;;  %vm1584_vm0 = vcmask 1044484   ;;  %vm1586_vm1 = vcmask 1045509   ;;  %vm1588_vm2 = vcmask 1046534  }
 0x1fe   : > { %v980_v50 = vld [vmem:[%s4593_s27 + $0x18] sm:$0xff]  ;;  %v979_v52 = vld [vmem:[%s4593_s27 + $0x10] sm:$0xff]  ;;  %v978_v55 = vld [vmem:[%s4593_s27 + $0x8] sm:$0xff]  ;;  %2982 = vmatpush3.msra.mxu1 %v1183_v56  ;;  %vm1590_vm3 = vcmask 1047559   ;;  %s3586_s23 = smov 32   ;;  %s4337_s26 = sld [smem:[#allocation5 + %s3728_s15]] }
 0x1ff   : > { %2945 = vmatprep.subr.mxu0 %v980_v50  ;;  %v977_v57 = vld [vmem:[%s4593_s27] sm:$0xff]  ;;  %2983 = vmatprep.subr.mxu1 %v3582_v53  ;;  %v973_v11 = vld [vmem:[#allocation7 + $0x78] sm:$0xff]  ;;  %v1273_v19 = vsub.s32 %v1270_v16, %v3965_v17  ;;  %s4597_s29 = sld [smem:[#allocation43_spill]]  ;;  %s3587_s1 = smov 64  }
 0x200   : > { %2946 = vmatpush3.msra.mxu0 %v980_v50  ;;  %2984 = vmatpush3.msra.mxu1 %v1182_v59  ;;  %v971_v9 = vld [vmem:[#allocation7 + $0x68] sm:$0xff]  ;;  %v972_v10 = vld [vmem:[#allocation7 + $0x70] sm:$0xff]  ;;  %s3588_s5 = smov 96   ;;  %s2633_s4 = scalar_lea.sflag [#allocation21], %s3861_s24 }
 0x201   : > { %2947 = vmatprep.subr.mxu0 %v979_v52  ;;  %2986 = vmatmul.mubr.msk.f32.vlgmr.msra.gmra.mxu1 %vm988_vm9, %v3927_v61  ;;  %v2860_v18 = vld [vmem:[%s4532_s8] ss:$0 sm:$0xff] }
 0x202   : > { %2948 = vmatpush3.msra.mxu0 %v979_v52  ;;  %2988 = vmatprep.subr.mxu1 %v3582_v53  ;;  %v3974_v25 = vld [vmem:[%s4594_s6] ss:$0 sm:$0xff] }
 0x203   : > { %2949 = vmatprep.subr.mxu0 %v978_v55  ;;  %2996 = vmatprep.mubr.msk.f32.mxu1 %vm3583_vm10, %v3582_v53 }
 0x204   : > { %2950 = vmatpush3.msra.mxu0 %v978_v55 }
 0x205   : > { %2951 = vmatprep.subr.mxu0 %v977_v57 }
 0x206   : > { %2952 = vmatpush3.msra.mxu0 %v977_v57 }
 0x207   : > { %2954 = vmatmul.mubr.msk.f32.vlgmr.msra.gmra.mxu0 %vm988_vm9, %v959_v60  ;;  %3028 = vmatprep.subr.mxu0 %v3582_v53 }
 0x208   : > { %2956 = vmatprep.mubr.msk.f32.mxu0 %vm988_vm9, %v960_v62 }
 0x20b   : > { %2957 = vmatmul.mubr.msk.f32.gmra.mxu0 %vm988_vm9, %v3936_v63 }
 0x20c   : > { %2959 = vmatprep.mubr.msk.f32.mxu0 %vm988_vm9, %v962_v0 }
 0x20f   : > { %2960 = vmatmul.mubr.msk.f32.gmra.mxu0 %vm988_vm9, %v3945_v1 }
 0x210   : > { %2962 = vmatprep.mubr.msk.f32.mxu0 %vm988_vm9, %v964_v2 }
 0x213   : > { %2963 = vmatmul.mubr.msk.f32.gmra.mxu0 %vm988_vm9, %v3950_v3 }
 0x214   : > { %2965 = vmatprep.mubr.msk.f32.mxu0 %vm988_vm9, %v966_v4 }
 0x217   : > { %2966 = vmatmul.mubr.msk.f32.gmra.mxu0 %vm988_vm9, %v967_v5 }
 0x218   : > { %2968 = vmatprep.mubr.msk.f32.mxu0 %vm988_vm9, %v968_v6 }
 0x21b   : > { %2969 = vmatmul.mubr.msk.f32.gmra.mxu0 %vm988_vm9, %v969_v7 }
 0x21c   : > { %2971 = vmatprep.mubr.msk.f32.mxu0 %vm988_vm9, %v970_v8 }
 0x21f   : > { %2972 = vmatmul.mubr.msk.f32.gmra.mxu0 %vm988_vm9, %v971_v9 }
 0x220   : > { %2974 = vmatprep.mubr.msk.f32.mxu0 %vm988_vm9, %v972_v10 }
 0x223   : > { %2975 = vmatmul.mubr.msk.f32.gmra.mxu0 %vm988_vm9, %v973_v11 }
 0x224   : > { %3036 = vmatprep.mubr.msk.f32.mxu0 %vm3583_vm10, %v3582_v53 }
 0x2c1   : > { %v1262_v21 = vpop.f32.mrf.mxu1 }
 0x2c2   : > { %v1263_v22 = vadd.f32 %v2860_v18, %v1262_v21  ;;  %v3998_v18 = vld [vmem:[%s4533_s9] ss:$0 sm:$0xff] }
 0x2c3   : > { %v2987_v24 = vpop.f32.mrf.mxu1 }
 0x2c4   : > { %v1274_v26 = vrot.slane %v1263_v22, %v1273_v19  ;;  %v1267_v32 = vcombine.high %v1263_v22, %v1263_v22 }
 0x2c6   : > { %v1282_v29 = vcombine.high %v1274_v26, %v1274_v26  ;;  %v1290_v30 = vrot.slane %v1274_v26, %v1273_v19  ;;  %v1281_v44 = vrot.slane %v1267_v32, %v1273_v19 }
 0x2c7   : > { %v2955_v20 = vpop.f32.mrf.mxu0 }
 0x2c8   : > { %v1109_v31 = vadd.f32 %v2955_v20, %v3974_v25  ;;  %v1319_v35 = vrot.slane %v1290_v30, %v3977_v27  ;;  %v1304_v37 = vrot.slane %v1282_v29, %v1273_v19  ;;  %v1312_v40 = vcombine.high %v1290_v30, %v1290_v30 }
 0x2c9   : > { %v1103_v23 = vpop.f32.mrf.mxu0  ;;  %v1283_v58 = vcombine.high %v1281_v44, %v1281_v44  ;;  %v1297_v62 = vrot.slane %v1281_v44, %v1273_v19 }
 0x2ca   : > { %v1104_v33 = vadd.f32 %v3974_v25, %v1103_v23  ;;  %v1357_v42 = vadd.f32 %v1319_v35, %v1109_v31  ;;  %v1323_v43 = vrot.slane %v1304_v37, %v3977_v27  ;;  %v1327_v46 = vrot.slane %v1312_v40, %v3977_v27 }
 0x2cb   : > { %v2958_v28 = vpop.f32.mrf.mxu0  ;;  %v1314_v48 = vcombine.high %v1304_v37, %v1304_v37  ;;  %v1335_v7 = vrot.slane %v1297_v62, %v3977_v27  ;;  %v1311_v9 = vrot.slane %v1283_v58, %v1273_v19  ;;  %v1313_v16 = vcombine.high %v1297_v62, %v1297_v62 }
 0x2cc   : > { %v1119_v36 = vadd.f32 %v2958_v28, %v3974_v25  ;;  %v1356_v41 = vadd.f32 %v1319_v35, %v1104_v33 }
 0x2cd   : > { %v1113_v34 = vpop.f32.mrf.mxu0  ;;  %v1331_v59 = vrot.slane %v1314_v48, %v3977_v27  ;;  %v1339_v20 = vrot.slane %v1311_v9, %v3977_v27  ;;  %v1315_v28 = vcombine.high %v1311_v9, %v1311_v9  ;;  %v1343_v32 = vrot.slane %v1313_v16, %v3977_v27 }
 0x2ce   : > { %v1114_v38 = vadd.f32 %v3974_v25, %v1113_v34  ;;  %3169 = vtanh.f32 %v1356_v41  ;;  %v1359_v49 = vadd.f32 %v1323_v43, %v1119_v36 }
 0x2cf   : > { %v2961_v39 = vpop.f32.mrf.mxu0  ;;  %3171 = vtanh.f32 %v1357_v42  ;;  %v1347_v42 = vrot.slane %v1315_v28, %v3977_v27 }
 0x2d0   : > { %v1129_v45 = vadd.f32 %v2961_v39, %v3974_v25  ;;  %v1358_v50 = vadd.f32 %v1323_v43, %v1114_v38  ;;  %3173 = vtanh.f32 %v1359_v49 }
 0x2d1   : > { %v1123_v47 = vpop.f32.mrf.mxu0 }
 0x2d2   : > { %v1124_v51 = vadd.f32 %v3974_v25, %v1123_v47  ;;  %3175 = vtanh.f32 %v1358_v50  ;;  %v1361_v55 = vadd.f32 %v1327_v46, %v1129_v45 }
 0x2d3   : > { %v2964_v52 = vpop.f32.mrf.mxu0 }
 0x2d4   : > { %v1360_v54 = vadd.f32 %v1327_v46, %v1124_v51  ;;  %v1139_v56 = vadd.f32 %v2964_v52, %v3974_v25 }
 0x2d5   : > { %v1133_v57 = vpop.f32.mrf.mxu0 }
 0x2d6   : > { %v1134_v60 = vadd.f32 %v3974_v25, %v1133_v57  ;;  %3177 = vtanh.f32 %v1360_v54  ;;  %v1363_v4 = vadd.f32 %v1331_v59, %v1139_v56 }
 0x2d7   : > { %v2967_v0 = vpop.f32.mrf.mxu0  ;;  %3179 = vtanh.f32 %v1361_v55 }
 0x2d8   : > { %v1362_v2 = vadd.f32 %v1331_v59, %v1134_v60  ;;  %v1149_v5 = vadd.f32 %v2967_v0, %v3974_v25 }
 0x2d9   : > { %v1143_v6 = vpop.f32.mrf.mxu0 }
 0x2da   : > { %3181 = vtanh.f32 %v1362_v2  ;;  %v1144_v8 = vadd.f32 %v3974_v25, %v1143_v6  ;;  %v1365_v13 = vadd.f32 %v1335_v7, %v1149_v5 }
 0x2db   : > { %v2970_v10 = vpop.f32.mrf.mxu0  ;;  %3183 = vtanh.f32 %v1363_v4  ;;  %v3170_v22 = vpop.eup %3169 }
 0x2dc   : > { %v1364_v11 = vadd.f32 %v1335_v7, %v1144_v8  ;;  %v1159_v12 = vadd.f32 %v2970_v10, %v3974_v25  ;;  %v3172_v23 = vpop.eup %3171  ;;  %v1395_v29 = vmul.f32 %v3170_v22, %v3998_v18 }
 0x2dd   : > { %v1153_v14 = vpop.f32.mrf.mxu0  ;;  %v3174_v30 = vpop.eup %3173  ;;  %v1396_v37 = vmul.f32 %v3172_v23, %v3998_v18 }
 0x2de   : > { %3185 = vtanh.f32 %v1364_v11  ;;  %v1154_v21 = vadd.f32 %v3974_v25, %v1153_v14  ;;  %v1367_v24 = vadd.f32 %v1339_v20, %v1159_v12  ;;  %v1412_v36 = vsel %vm1411_vm11, %v1395_v29, 0.0 }
 0x2df   : > { %v2973_v19 = vpop.f32.mrf.mxu0  ;;  %3187 = vtanh.f32 %v1365_v13  ;;  %v3176_v34 = vpop.eup %3175  ;;  %1413 = vadd.xlane.f32.xlu0 %v1412_v36  ;;  %v1398_v47 = vmul.f32 %v3174_v30, %v3998_v18  ;;  %v1415_v50 = vsel %vm1411_vm11, %v1396_v37, 0.0 }
 0x2e0   : > { %v1366_v26 = vadd.f32 %v1339_v20, %v1154_v21  ;;  %v1169_v31 = vadd.f32 %v2973_v19, %v3974_v25  ;;  %v1397_v39 = vmul.f32 %v3176_v34, %v3998_v18 }
 0x2e1   : > { %v1163_v33 = vpop.f32.mrf.mxu0  ;;  %v1421_v56 = vsel %vm1411_vm11, %v1398_v47, 0.0 }
 0x2e2   : > { %3189 = vtanh.f32 %v1366_v26  ;;  %v1164_v35 = vadd.f32 %v3974_v25, %v1163_v33  ;;  %v1369_v43 = vadd.f32 %v1343_v32, %v1169_v31  ;;  %v1418_v46 = vsel %vm1411_vm11, %v1397_v39, 0.0  ;;  %v2863_v33 = vld [vmem:[#allocation6] ss:$0 sm:$0xff] }
 0x2e3   : > { %v2976_v38 = vpop.f32.mrf.mxu0  ;;  %v3178_v40 = vpop.eup %3177  ;;  %3191 = vtanh.f32 %v1367_v24  ;;  %1419 = vadd.xlane.f32.xlu1 %v1418_v46  ;;  %1416 = vadd.xlane.f32.xlu0 %v1415_v50 }
 0x2e4   : > { %v1368_v41 = vadd.f32 %v1343_v32, %v1164_v35  ;;  %v1179_v44 = vadd.f32 %v2976_v38, %v3974_v25  ;;  %v3180_v48 = vpop.eup %3179  ;;  %v1399_v51 = vmul.f32 %v3178_v40, %v3998_v18 }
 0x2e5   : > { %v1173_v45 = vpop.f32.mrf.mxu0  ;;  %v1400_v57 = vmul.f32 %v3180_v48, %v3998_v18 }
 0x2e6   : > { %3193 = vtanh.f32 %v1368_v41  ;;  %v1174_v49 = vadd.f32 %v3974_v25, %v1173_v45  ;;  %v1371_v55 = vadd.f32 %v1347_v42, %v1179_v44  ;;  %v1424_v59 = vsel %vm1411_vm11, %v1399_v51, 0.0 }
 0x2e7   : > { %v3182_v52 = vpop.eup %3181  ;;  %3195 = vtanh.f32 %v1369_v43  ;;  %1422 = vadd.xlane.f32.xlu1 %v1421_v56  ;;  %1425 = vadd.xlane.f32.xlu0 %v1424_v59  ;;  %v1427_v62 = vsel %vm1411_vm11, %v1400_v57, 0.0  ;;  %v1503_v45 = vand.u32 127, %v1271_v15 }
 0x2e8   : > { %v1370_v54 = vadd.f32 %v1347_v42, %v1174_v49  ;;  %v3184_v58 = vpop.eup %3183  ;;  %v1401_v25 = vmul.f32 %v3182_v52, %v3998_v18 }
 0x2e9   : > { %v1402_v0 = vmul.f32 %v3184_v58, %v3998_v18  ;;  %v1508_v47 = vadd.s32 4294967288, %v1503_v45  ;;  %v4042_v50 = vsub.s32 %v1503_v45, %v3965_v17  ;;  %v1611_v45 = vsub.s32 3, %v3965_v17 }
 0x2ea   : > { %3197 = vtanh.f32 %v1370_v54  ;;  %v1430_v4 = vsel %vm1411_vm11, %v1401_v25, 0.0 }
 0x2eb   : > { %v3186_v60 = vpop.eup %3185  ;;  %3199 = vtanh.f32 %v1371_v55  ;;  %1428 = vadd.xlane.f32.xlu1 %v1427_v62  ;;  %1431 = vadd.xlane.f32.xlu0 %v1430_v4  ;;  %v1433_v8 = vsel %vm1411_vm11, %v1402_v0, 0.0  ;;  %v4045_v51 = vsub.s32 %v1508_v47, %v3965_v17  ;;  %v1603_v47 = vsub.s32 1, %v3965_v17 }
 0x2ec   : > { %v3188_v2 = vpop.eup %3187  ;;  %v1403_v5 = vmul.f32 %v3186_v60, %v3998_v18 }
 0x2ed   : > { %v1404_v9 = vmul.f32 %v3188_v2, %v3998_v18 }
 0x2ee   : > { %v1436_v10 = vsel %vm1411_vm11, %v1403_v5, 0.0 }
 0x2ef   : > { %v3190_v6 = vpop.eup %3189  ;;  %1434 = vadd.xlane.f32.xlu1 %v1433_v8  ;;  %1437 = vadd.xlane.f32.xlu0 %v1436_v10  ;;  %v1439_v13 = vsel %vm1411_vm11, %v1404_v9, 0.0 }
 0x2f0   : > { %v3192_v7 = vpop.eup %3191  ;;  %v1405_v11 = vmul.f32 %v3190_v6, %v3998_v18 }
 0x2f1   : > { %v1406_v14 = vmul.f32 %v3192_v7, %v3998_v18 }
 0x2f2   : > { %v1442_v20 = vsel %vm1411_vm11, %v1405_v11, 0.0 }
 0x2f3   : > { %v3194_v12 = vpop.eup %3193  ;;  %1440 = vadd.xlane.f32.xlu1 %v1439_v13  ;;  %1443 = vadd.xlane.f32.xlu0 %v1442_v20  ;;  %v1445_v19 = vsel %vm1411_vm11, %v1406_v14, 0.0 }
 0x2f4   : > { %v3196_v16 = vpop.eup %3195  ;;  %v1407_v21 = vmul.f32 %v3194_v12, %v3998_v18 }
 0x2f5   : > { %v1408_v23 = vmul.f32 %v3196_v16, %v3998_v18 }
 0x2f6   : > { %v1448_v26 = vsel %vm1411_vm11, %v1407_v21, 0.0 }
 0x2f7   : > { %v3198_v22 = vpop.eup %3197  ;;  %1446 = vadd.xlane.f32.xlu1 %v1445_v19  ;;  %1449 = vadd.xlane.f32.xlu0 %v1448_v26  ;;  %v1451_v29 = vsel %vm1411_vm11, %v1408_v23, 0.0 }
 0x2f8   : > { %v3200_v24 = vpop.eup %3199  ;;  %v1409_v28 = vmul.f32 %v3198_v22, %v3998_v18 }
 0x2f9   : > { %v1410_v30 = vmul.f32 %v3200_v24, %v3998_v18 }
 0x2fa   : > { %v1454_v31 = vsel %vm1411_vm11, %v1409_v28, 0.0 }
 0x2fb   : > { %1452 = vadd.xlane.f32.xlu1 %v1451_v29  ;;  %1455 = vadd.xlane.f32.xlu0 %v1454_v31  ;;  %v1457_v32 = vsel %vm1411_vm11, %v1410_v30, 0.0 }
 0x2ff   : > { %1458 = vadd.xlane.f32.xlu1 %v1457_v32 }
 0x311   : > { %1467 = vperm.xlu0 %3167, %v2863_v33  }
 0x368   : > { %v1414_v34 = vpop.xlane.xlu0 %1413 }
 0x36c   : > { %v1420_v35 = vpop.xlane.xlu1 %1419  ;;  %v1417_v36 = vpop.xlane.xlu0 %1416 }
 0x370   : > { %v1423_v37 = vpop.xlane.xlu1 %1422  ;;  %v1426_v38 = vpop.xlane.xlu0 %1425 }
 0x374   : > { %v1429_v39 = vpop.xlane.xlu1 %1428  ;;  %v1432_v40 = vpop.xlane.xlu0 %1431 }
 0x378   : > { %v1438_v41 = vpop.xlane.xlu0 %1437  ;;  %v1435_v42 = vpop.xlane.xlu1 %1434 }
 0x37c   : > { %v1444_v43 = vpop.xlane.xlu0 %1443  ;;  %v1441_v18 = vpop.xlane.xlu1 %1440 }
 0x380   : > { %v1450_v44 = vpop.xlane.xlu0 %1449  ;;  %v1447_v46 = vpop.xlane.xlu1 %1446 }
 0x384   : > { %v1456_v48 = vpop.xlane.xlu0 %1455  ;;  %v1453_v49 = vpop.xlane.xlu1 %1452 }
 0x388   : > { %v1459_v6 = vpop.xlane.xlu1 %1458 }
 0x38c   : > { %v1468_v52 = vpop.permute.xlu0 %1467 }
 0x38d   : > { %v4047_v54 = vadd.f32 %v1468_v52, %v1414_v34  ;;  %v4049_v55 = vadd.f32 %v1468_v52, %v1417_v36  ;;  %v4051_v56 = vadd.f32 %v1468_v52, %v1420_v35  ;;  %v4053_v57 = vadd.f32 %v1468_v52, %v1423_v37 }
 0x38e   : > { %v4055_v15 = vadd.f32 %v1468_v52, %v1426_v38  ;;  %v4057_v58 = vadd.f32 %v1468_v52, %v1429_v39  ;;  %v4059_v59 = vadd.f32 %v1468_v52, %v1432_v40  ;;  %v4061_v25 = vadd.f32 %v1468_v52, %v1435_v42 }
 0x38f   : > { %v4063_v60 = vadd.f32 %v1468_v52, %v1438_v41  ;;  %v4065_v62 = vadd.f32 %v1468_v52, %v1441_v18  ;;  %v4067_v0 = vadd.f32 %v1468_v52, %v1444_v43  ;;  %v4069_v2 = vadd.f32 %v1468_v52, %v1447_v46 }
 0x390   : > { %v4071_v4 = vadd.f32 %v1468_v52, %v1450_v44  ;;  %v4073_v5 = vadd.f32 %v1468_v52, %v1453_v49  ;;  %v1507_v7 = vrot.slane %v4047_v54, %v4042_v50  ;;  %v1512_v8 = vrot.slane %v4049_v55, %v4045_v51 }
 0x391   : > { %v1518_v9 = vrot.slane %v4051_v56, %v4042_v50  ;;  %v1522_v10 = vrot.slane %v4053_v57, %v4045_v51  ;;  %v4083_v11 = vadd.f32 %v1468_v52, %v1456_v48  ;;  %v4085_v12 = vadd.f32 %v1468_v52, %v1459_v6 }
 0x392   : > { %v1527_v13 = vrot.slane %v4055_v15, %v4042_v50  ;;  %v1531_v14 = vrot.slane %v4057_v58, %v4045_v51  ;;  %v1514_v16 = vsel %vm1513_vm12, %v1512_v8, %v1507_v7  ;;  %v1536_v21 = vrot.slane %v4059_v59, %v4042_v50 }
 0x393   : > { %v1523_v20 = vsel %vm1513_vm12, %v1522_v10, %v1518_v9  ;;  %v1540_v22 = vrot.slane %v4061_v25, %v4045_v51  ;;  %v1545_v23 = vrot.slane %v4063_v60, %v4042_v50  ;;  %v1549_v24 = vrot.slane %v4065_v62, %v4045_v51 }
 0x394   : > { %v1532_v19 = vsel %vm1513_vm12, %v1531_v14, %v1527_v13  ;;  %v1554_v26 = vrot.slane %v4067_v0, %v4042_v50  ;;  %v1558_v28 = vrot.slane %v4069_v2, %v4045_v51  ;;  %v1563_v29 = vrot.slane %v4071_v4, %v4042_v50 }
 0x395   : > { %v1567_v30 = vrot.slane %v4073_v5, %v4045_v51  ;;  %v1579_v31 = vsel %vm1578_vm13, %v1523_v20, %v1514_v16  ;;  %v1541_v32 = vsel %vm1513_vm12, %v1540_v22, %v1536_v21  ;;  %v1572_v33 = vrot.slane %v4083_v11, %v4042_v50 }
 0x396   : > { %v1576_v34 = vrot.slane %v4085_v12, %v4045_v51  ;;  %v1581_v35 = vsel %vm1580_vm14, %v1532_v19, %v1579_v31  ;;  %v1550_v36 = vsel %vm1513_vm12, %v1549_v24, %v1545_v23  ;;  %v1559_v38 = vsel %vm1513_vm12, %v1558_v28, %v1554_v26 }
 0x397   : > { %v1583_v37 = vsel %vm1582_vm15, %v1541_v32, %v1581_v35  ;;  %v1568_v40 = vsel %vm1513_vm12, %v1567_v30, %v1563_v29  ;;  %v1615_v52 = vsub.s32 4, %v3965_v17  ;;  %v1619_v10 = vsub.s32 5, %v3965_v17 }
 0x398   : > { %v1585_v39 = vsel %vm1584_vm0, %v1550_v36, %v1583_v37  ;;  %v1577_v42 = vsel %vm1513_vm12, %v1576_v34, %v1572_v33  ;;  %v1623_v21 = vsub.s32 6, %v3965_v17  ;;  %v1627_v26 = vsub.s32 7, %v3965_v17 }
 0x399   : > { %v1587_v41 = vsel %vm1586_vm1, %v1559_v38, %v1585_v39 }
 0x39a   : > { %v1589_v43 = vsel %vm1588_vm2, %v1568_v40, %v1587_v41 }
 0x39b   : > { %v1591_v18 = vsel %vm1590_vm3, %v1577_v42, %v1589_v43 }
 0x39c   : > { %v1593_v44 = vsel %vm1411_vm11, %v1591_v18, -inf }
 0x39d   : > { %1594 = vmax.xlane.f32.xlu1 %v1593_v44 }
 0x426   : > { %v1595_v46 = vpop.xlane.xlu1 %1594 }
 0x427   : > { %v1600_v48 = vrot.slane %v1595_v46, %v3977_v27  ;;  %v1612_v6 = vrot.slane %v1595_v46, %v1611_v45  ;;  %v1604_v7 = vrot.slane %v1595_v46, %v1603_v47  ;;  %v1616_v13 = vrot.slane %v1595_v46, %v1615_v52 }
 0x428   : > { %v1620_v22 = vrot.slane %v1595_v46, %v1619_v10  ;;  %v1628_v31 = vrot.slane %v1595_v46, %v1627_v26 }
 0x429   : > { %v1637_v49 = vsub.f32 %v4047_v54, %v1600_v48  ;;  %v1638_v8 = vsub.f32 %v4049_v55, %v1600_v48  ;;  %v1644_v14 = vsub.f32 %v4061_v25, %v1612_v6  ;;  %v1607_v54 = vsub.s32 2, %v3965_v17 }
 0x42a   : > { %v1639_v16 = vsub.f32 %v4051_v56, %v1604_v7  ;;  %v1646_v55 = vsub.f32 %v4065_v62, %v1616_v13  ;;  %v1640_v24 = vsub.f32 %v4053_v57, %v1604_v7  ;;  %v1624_v56 = vrot.slane %v1595_v46, %v1623_v21 }
 0x42b   : > { %v1653_v9 = vmul.f32 1.442695, %v1637_v49  ;;  %v1655_v20 = vmul.f32 1.442695, %v1638_v8  ;;  %v1667_v19 = vmul.f32 1.442695, %v1644_v14  ;;  %v1608_v23 = vrot.slane %v1595_v46, %v1607_v54 }
 0x42c   : > { %v1657_v25 = vmul.f32 1.442695, %v1639_v16  ;;  %v1648_v28 = vsub.f32 %v4069_v2, %v1620_v22  ;;  %v1671_v29 = vmul.f32 1.442695, %v1646_v55  ;;  %v1659_v62 = vmul.f32 1.442695, %v1640_v24 }
 0x42d   : > { %3201 = vpow2.f32 %v1653_v9  ;;  %v1641_v30 = vsub.f32 %v4055_v15, %v1608_v23  ;;  %v1650_v57 = vsub.f32 %v4073_v5, %v1624_v56  ;;  %v1642_v33 = vsub.f32 %v4057_v58, %v1608_v23  ;;  %v2061_v16 = vld [vmem:[%s4534_s11 + $0x18] sm:$0xff]  ;;  %v2058_v55 = vld [vmem:[%s4534_s11] sm:$0xff] }
 0x42e   : > { %3203 = vpow2.f32 %v1655_v20  ;;  %v1675_v32 = vmul.f32 1.442695, %v1648_v28  ;;  %v1652_v2 = vsub.f32 %v4085_v12, %v1628_v31  ;;  %v1643_v36 = vsub.f32 %v4059_v59, %v1612_v6  ;;  %v2060_v20 = vld [vmem:[%s4534_s11 + $0x10] sm:$0xff]  ;;  %2989 = vmatpush3.msra.mxu1 %v2061_v16 }
 0x42f   : > { %3205 = vpow2.f32 %v1667_v19  ;;  %v1661_v34 = vmul.f32 1.442695, %v1641_v30  ;;  %v1679_v15 = vmul.f32 1.442695, %v1650_v57  ;;  %v1663_v37 = vmul.f32 1.442695, %v1642_v33  ;;  %2990 = vmatprep.subr.mxu1 %v3582_v53 }
 0x430   : > { %3207 = vpow2.f32 %v1657_v25  ;;  %v1683_v58 = vmul.f32 1.442695, %v1652_v2  ;;  %v1645_v39 = vsub.f32 %v4063_v60, %v1616_v13  ;;  %v1665_v40 = vmul.f32 1.442695, %v1643_v36  ;;  %2991 = vmatpush3.msra.mxu1 %v2060_v20 }
 0x431   : > { %3209 = vpow2.f32 %v1671_v29  ;;  %v1647_v12 = vsub.f32 %v4067_v0, %v1620_v22  ;;  %v1649_v18 = vsub.f32 %v4071_v4, %v1624_v56  ;;  %v1651_v48 = vsub.f32 %v4083_v11, %v1628_v31  ;;  %v2059_v22 = vld [vmem:[%s4534_s11 + $0x8] sm:$0xff]  ;;  %2992 = vmatprep.subr.mxu1 %v3582_v53 }
 0x432   : > { %3211 = vpow2.f32 %v1659_v62  ;;  %v1669_v42 = vmul.f32 1.442695, %v1645_v39  ;;  %2993 = vmatpush3.msra.mxu1 %v2059_v22 }
 0x433   : > { %3213 = vpow2.f32 %v1675_v32  ;;  %v1673_v44 = vmul.f32 1.442695, %v1647_v12  ;;  %v1677_v49 = vmul.f32 1.442695, %v1649_v18  ;;  %v1681_v7 = vmul.f32 1.442695, %v1651_v48  ;;  %2994 = vmatprep.subr.mxu1 %v3582_v53 }
 0x434   : > { %3215 = vpow2.f32 %v1661_v34  ;;  %2995 = vmatpush3.msra.mxu1 %v2058_v55 }
 0x435   : > { %3217 = vpow2.f32 %v1679_v15  ;;  %2997 = vmatmul.mubr.msk.f32.vlgmr.msra.gmra.mxu1 %vm988_vm9, %v3927_v61  ;;  %2999 = vmatprep.subr.mxu1 %v3582_v53 }
 0x436   : > { %3219 = vpow2.f32 %v1663_v37  ;;  %3007 = vmatprep.mubr.msk.f32.mxu1 %vm3583_vm10, %v3582_v53 }
 0x437   : > { %3221 = vpow2.f32 %v1683_v58 }
 0x438   : > { %3223 = vpow2.f32 %v1665_v40 }
 0x439   : > { %3225 = vpow2.f32 %v1669_v42 }
 0x43a   : > { %v4159_v35 = vpop.eup %3201  ;;  %3227 = vpow2.f32 %v1673_v44 }
 0x43b   : > { %1702 = vperm.xlu1 %3168, %v4159_v35   ;;  %v4164_v38 = vpop.eup %3203  ;;  %3229 = vpow2.f32 %v1677_v49 }
 0x43c   : > { %v4167_v5 = vpop.eup %3205  ;;  %3231 = vpow2.f32 %v1681_v7 }
 0x43d   : > { %v4170_v41 = vpop.eup %3207  ;;  %1723 = vperm.xlu0 %3167, %v4167_v5  }
 0x43e   : > { %v4174_v59 = vpop.eup %3209 }
 0x43f   : > { %1705 = vperm.xlu1 %3168, %v4164_v38   ;;  %v4177_v43 = vpop.eup %3211 }
 0x440   : > { %v4181_v60 = vpop.eup %3213 }
 0x441   : > { %1729 = vperm.xlu0 %3167, %v4174_v59   ;;  %v4184_v46 = vpop.eup %3215 }
 0x442   : > { %v4188_v0 = vpop.eup %3217 }
 0x443   : > { %1708 = vperm.xlu1 %3168, %v4170_v41   ;;  %v4191_v6 = vpop.eup %3219 }
 0x444   : > { %v4195_v4 = vpop.eup %3221 }
 0x445   : > { %1735 = vperm.xlu0 %3167, %v4181_v60   ;;  %v4197_v8 = vpop.eup %3223 }
 0x446   : > { %v4201_v11 = vpop.eup %3225 }
 0x447   : > { %1711 = vperm.xlu1 %3168, %v4177_v43   ;;  %v4204_v9 = vpop.eup %3227 }
 0x448   : > { %v4207_v13 = vpop.eup %3229 }
 0x449   : > { %1741 = vperm.xlu0 %3167, %v4188_v0   ;;  %v4210_v14 = vpop.eup %3231 }
 0x44b   : > { %1714 = vperm.xlu1 %3168, %v4184_v46  }
 0x44d   : > { %1747 = vperm.xlu0 %3167, %v4195_v4  }
 0x44f   : > { %1717 = vperm.xlu1 %3168, %v4191_v6  }
 0x453   : > { %1720 = vperm.xlu1 %3168, %v4197_v8  }
 0x457   : > { %1726 = vperm.xlu1 %3168, %v4201_v11  }
 0x45b   : > { %1732 = vperm.xlu1 %3168, %v4204_v9  }
 0x45f   : > { %1738 = vperm.xlu1 %3168, %v4207_v13  }
 0x463   : > { %1744 = vperm.xlu1 %3168, %v4210_v14  }
 0x4b6   : > { %v1703_v19 = vpop.permute.xlu1 %1702 }
 0x4b7   : > { %v1752_v40 = vrot.slane %v1703_v19, %v4042_v50 }
 0x4b8   : > { %v1724_v56 = vpop.permute.xlu0 %1723 }
 0x4b9   : > { %v1783_v39 = vrot.slane %v1724_v56, %v4045_v51 }
 0x4ba   : > { %v1706_v23 = vpop.permute.xlu1 %1705 }
 0x4bb   : > { %v1756_v2 = vrot.slane %v1706_v23, %v4045_v51 }
 0x4bc   : > { %v1730_v29 = vpop.permute.xlu0 %1729 }
 0x4bd   : > { %v1792_v18 = vrot.slane %v1730_v29, %v4045_v51  ;;  %v1757_v49 = vsel %vm1513_vm12, %v1756_v2, %v1752_v40 }
 0x4be   : > { %v1709_v24 = vpop.permute.xlu1 %1708 }
 0x4bf   : > { %v1761_v15 = vrot.slane %v1709_v24, %v4042_v50 }
 0x4c0   : > { %v1736_v31 = vpop.permute.xlu0 %1735 }
 0x4c1   : > { %v1801_v7 = vrot.slane %v1736_v31, %v4045_v51 }
 0x4c2   : > { %v1712_v25 = vpop.permute.xlu1 %1711 }
 0x4c3   : > { %v1765_v32 = vrot.slane %v1712_v25, %v4045_v51 }
 0x4c4   : > { %v1742_v33 = vpop.permute.xlu0 %1741 }
 0x4c5   : > { %v1766_v12 = vsel %vm1513_vm12, %v1765_v32, %v1761_v15  ;;  %v1810_v22 = vrot.slane %v1742_v33, %v4045_v51 }
 0x4c6   : > { %v1715_v28 = vpop.permute.xlu1 %1714  ;;  %v1821_v55 = vsel %vm1578_vm13, %v1766_v12, %v1757_v49  ;;  %v2864_v49 = vld [vmem:[%s4535_s12] ss:$0 sm:$0xff] }
 0x4c7   : > { %v1770_v37 = vrot.slane %v1715_v28, %v4042_v50 }
 0x4c8   : > { %v1748_v19 = vpop.permute.xlu0 %1747 }
 0x4ca   : > { %v1718_v30 = vpop.permute.xlu1 %1717 }
 0x4cb   : > { %v1774_v61 = vrot.slane %v1718_v30, %v4045_v51  ;;  %v1819_v30 = vrot.slane %v1748_v19, %v4045_v51  ;;  %v3251_v19 = vld [vmem:[#allocation7 + $0x8] sm:$0xff] }
 0x4cd   : > { %v1775_v44 = vsel %vm1513_vm12, %v1774_v61, %v1770_v37 }
 0x4ce   : > { %v1721_v62 = vpop.permute.xlu1 %1720  ;;  %v1822_v24 = vsel %vm1580_vm14, %v1775_v44, %v1821_v55  ;;  %v2167_v44 = vld [vmem:[#allocation15 + $0x18] sm:$0xff] }
 0x4cf   : > { %v1779_v36 = vrot.slane %v1721_v62, %v4042_v50  ;;  %3000 = vmatpush3.msra.mxu1 %v2167_v44 }
 0x4d0   : > { %3001 = vmatprep.subr.mxu1 %v3582_v53 }
 0x4d1   : > { %v1784_v16 = vsel %vm1513_vm12, %v1783_v39, %v1779_v36 }
 0x4d2   : > { %v1727_v57 = vpop.permute.xlu1 %1726  ;;  %v1823_v56 = vsel %vm1582_vm15, %v1784_v16, %v1822_v24  ;;  %v3252_v24 = vld [vmem:[#allocation7] sm:$0xff] }
 0x4d3   : > { %v1788_v58 = vrot.slane %v1727_v57, %v4042_v50 }
 0x4d5   : > { %v1793_v23 = vsel %vm1513_vm12, %v1792_v18, %v1788_v58 }
 0x4d6   : > { %v1733_v34 = vpop.permute.xlu1 %1732  ;;  %v1824_v62 = vsel %vm1584_vm0, %v1793_v23, %v1823_v56 }
 0x4d7   : > { %v1797_v42 = vrot.slane %v1733_v34, %v4042_v50 }
 0x4d9   : > { %v1802_v25 = vsel %vm1513_vm12, %v1801_v7, %v1797_v42 }
 0x4da   : > { %v1739_v48 = vpop.permute.xlu1 %1738  ;;  %v1825_v57 = vsel %vm1586_vm1, %v1802_v25, %v1824_v62 }
 0x4db   : > { %v1806_v20 = vrot.slane %v1739_v48, %v4042_v50 }
 0x4dd   : > { %v1811_v28 = vsel %vm1513_vm12, %v1810_v22, %v1806_v20 }
 0x4de   : > { %v1745_v29 = vpop.permute.xlu1 %1744  ;;  %v1826_v33 = vsel %vm1588_vm2, %v1811_v28, %v1825_v57 }
 0x4df   : > { %v1815_v31 = vrot.slane %v1745_v29, %v4042_v50 }
 0x4e1   : > { %v1820_v32 = vsel %vm1513_vm12, %v1819_v30, %v1815_v31  ;;  %v3253_v30 = vld [vmem:[#allocation7 + $0x10] sm:$0xff] }
 0x4e2   : > { %v1827_v61 = vsel %vm1590_vm3, %v1820_v32, %v1826_v33 }
 0x4e3   : > { %v1829_v34 = vsel %vm1411_vm11, %v1827_v61, 0.0 }
 0x4e4   : > { %1830 = vadd.xlane.f32.xlu1 %v1829_v34 }
 0x56d   : > { %v1831_v2 = vpop.xlane.xlu1 %1830 }
 0x56e   : > { %3233 = vrcp.f32 %v1831_v2 }
 0x57b   : > { %v3234_v15 = vpop.eup %3233 }
 0x57c   : > { %v1853_v36 = vrot.slane %v3234_v15, %v1615_v52  ;;  %v1837_v37 = vrot.slane %v3234_v15, %v3977_v27  ;;  %v1865_v40 = vrot.slane %v3234_v15, %v1627_v26  ;;  %v1841_v18 = vrot.slane %v3234_v15, %v1603_v47 }
 0x57e   : > { %v1883_v58 = vmul.f32 %v4174_v59, %v1853_v36  ;;  %v1874_v39 = vmul.f32 %v4159_v35, %v1837_v37  ;;  %v1888_v12 = vmul.f32 %v4210_v14, %v1865_v40  ;;  %v1875_v42 = vmul.f32 %v4164_v38, %v1837_v37 }
 0x57f   : > { %v1876_v27 = vmul.f32 %v4170_v41, %v1841_v18  ;;  %v1877_v52 = vmul.f32 %v4177_v43, %v1841_v18  ;;  %v1845_v35 = vrot.slane %v3234_v15, %v1607_v54  ;;  %v1849_v38 = vrot.slane %v3234_v15, %v1611_v45  ;;  %v3256_v18 = vld [vmem:[#allocation7 + $0x40] sm:$0xff] }
 0x580   : > { %1937 = vperm.xlu1 %3168, %v1883_v58   ;;  %1892 = vperm.xlu0 %3167, %v1874_v39   ;;  %v1882_v43 = vmul.f32 %v4201_v11, %v1853_v36  ;;  %v1857_v54 = vrot.slane %v3234_v15, %v1619_v10  ;;  %v1861_v45 = vrot.slane %v3234_v15, %v1623_v21  ;;  %v2164_v21 = vld [vmem:[#allocation15] sm:$0xff] }
 0x581   : > { %v1878_v26 = vmul.f32 %v4184_v46, %v1845_v35  ;;  %v1879_v59 = vmul.f32 %v4191_v6, %v1845_v35  ;;  %v1880_v47 = vmul.f32 %v4197_v8, %v1849_v38  ;;  %v1881_v41 = vmul.f32 %v4167_v5, %v1849_v38  ;;  %v2135_v5 = vpop.f32.mrf.mxu1 }
 0x582   : > { %v1884_v46 = vmul.f32 %v4204_v9, %v1857_v54  ;;  %v1885_v6 = vmul.f32 %v4181_v60, %v1857_v54  ;;  %v1886_v8 = vmul.f32 %v4207_v13, %v1861_v45  ;;  %v1887_v14 = vmul.f32 %v4188_v0, %v1861_v45  ;;  %v2166_v9 = vld [vmem:[#allocation15 + $0x10] sm:$0xff]  ;;  %v2165_v60 = vld [vmem:[#allocation15 + $0x8] sm:$0xff] }
 0x583   : > { %v2998_v11 = vpop.f32.mrf.mxu1  ;;  %v1889_v10 = vmul.f32 %v4195_v4, %v1865_v40  ;;  %3002 = vmatpush3.msra.mxu1 %v2166_v9  ;;  %v975_v0 = vld [vmem:[#allocation3] sm:$0xff]  ;;  %v2136_v7 = vadd.f32 %v2864_v49, %v2135_v5  ;;  %v2539_v9 = vstv %s4337_s26 }
 0x584   : > { %1962 = vperm.xlu1 %3168, %v1888_v12   ;;  %1897 = vperm.xlu0 %3167, %v1875_v42   ;;  %v3255_v42 = vld [vmem:[#allocation7 + $0x30] sm:$0xff]  ;;  %vm4388_vm4 = vcmp.lt.s32.totalorder %v3965_v17, %v2539_v9 }
 0x585   : > { %3003 = vmatprep.subr.mxu1 %v3582_v53  ;;  %v2866_v20 = vmul.f32 -1.442695, %v2136_v7 }
 0x586   : > { %3004 = vmatpush3.msra.mxu1 %v2165_v60 }
 0x587   : > { %3005 = vmatprep.subr.mxu1 %v3582_v53  ;;  %3235 = vpow2.f32 %v2866_v20 }
 0x588   : > { %1902 = vperm.xlu0 %3167, %v1876_v27   ;;  %3006 = vmatpush3.msra.mxu1 %v2164_v21 }
 0x589   : > { %3010 = vmatprep.subr.mxu1 %v3582_v53 }
 0x58c   : > { %1907 = vperm.xlu0 %3167, %v1877_v52   ;;  %v3257_v52 = vld [vmem:[#allocation7 + $0x48] sm:$0xff] }
 0x590   : > { %1912 = vperm.xlu0 %3167, %v1878_v26  }
 0x594   : > { %1917 = vperm.xlu0 %3167, %v1879_v59   ;;  %v3236_v37 = vpop.eup %3235 }
 0x595   : > { %v2142_v38 = vadd.f32 1.0, %v3236_v37 }
 0x597   : > { %3237 = vrcp.f32 %v2142_v38 }
 0x598   : > { %1922 = vperm.xlu0 %3167, %v1880_v47  }
 0x59c   : > { %1927 = vperm.xlu0 %3167, %v1881_v41  }
 0x5a0   : > { %1932 = vperm.xlu0 %3167, %v1882_v43  }
 0x5a4   : > { %1942 = vperm.xlu0 %3167, %v1884_v46  }
 0x5a8   : > { %1947 = vperm.xlu0 %3167, %v1885_v6  }
 0x5ac   : > { %1952 = vperm.xlu0 %3167, %v1886_v8   ;;  %v3258_v8 = vld [vmem:[#allocation7 + $0x70] sm:$0xff] }
 0x5b0   : > { %1957 = vperm.xlu0 %3167, %v1887_v14  }
 0x5b4   : > { %1967 = vperm.xlu0 %3167, %v1889_v10   ;;  %v3259_v10 = vld [vmem:[#allocation7 + $0x50] sm:$0xff] }
 0x5b8   : > { %2413 = vrot.lane.b32.xlu0 %v975_v0, %s3586_s23 }
 0x5fb   : > { %v4301_v4 = vpop.permute.xlu0 %1892  ;;  %v4327_v32 = vpop.permute.xlu1 %1937 }
 0x5fc   : > { %v1970_v25 = vmul.f32 %v3252_v24, %v4301_v4  ;;  %v1979_v35 = vmul.f32 %v3257_v52, %v4327_v32  ;;  %v2588_v60 = vrot.slane %v4327_v32, %v4045_v51  ;;  %v2548_v21 = vrot.slane %v4301_v4, %v4042_v50  ;;  %v3260_v24 = vld [vmem:[#allocation7 + $0x58] sm:$0xff] }
 0x5fe   : > { %v1986_v31 = vsel %vm988_vm9, %v1970_v25, 0.0  ;;  %v2023_v45 = vsel %vm988_vm9, %v1979_v35, 0.0 }
 0x5ff   : > { %v4303_v13 = vpop.permute.xlu0 %1897  ;;  %v4345_v26 = vpop.permute.xlu1 %1962 }
 0x600   : > { %v1971_v23 = vmul.f32 %v3251_v19, %v4303_v13  ;;  %v1984_v5 = vmul.f32 %v3258_v8, %v4345_v26  ;;  %v2552_v19 = vrot.slane %v4303_v13, %v4045_v51 }
 0x602   : > { %v1987_v29 = vsel %vm988_vm9, %v1971_v23, 0.0 }
 0x603   : > { %v4305_v48 = vpop.permute.xlu0 %1902  ;;  %v1988_v33 = vadd.f32 %v1987_v29, %v1986_v31  ;;  %v2611_v29 = vrot.slane %v4345_v26, %v4042_v50 }
 0x604   : > { %v1972_v62 = vmul.f32 %v3253_v30, %v4305_v48 }
 0x605   : > { %v1989_v40 = vrot.slane %v1988_v33, 4 }
 0x606   : > { %v1995_v2 = vsel %vm988_vm9, %v1972_v62, 0.0  ;;  %v2557_v62 = vrot.slane %v4305_v48, %v4042_v50 }
 0x607   : > { %v4310_v16 = vpop.permute.xlu0 %1907  ;;  %v1990_v46 = vadd.f32 %v1989_v40, %v1988_v33 }
 0x608   : > { %v1973_v28 = vmul.f32 %v4310_v16, %v3936_v63  ;;  %v3254_v63 = vld [vmem:[#allocation7 + $0x20] sm:$0xff]  ;;  %v2561_v23 = vrot.slane %v4310_v16, %v4045_v51 }
 0x609   : > { %v1991_v20 = vrot.slane %v1990_v46, 2 }
 0x60a   : > { %v1996_v61 = vsel %vm988_vm9, %v1973_v28, 0.0  ;;  %v4366_v28 = vsel %vm988_vm9, %v1984_v5, 0.0 }
 0x60b   : > { %v4312_v22 = vpop.permute.xlu0 %1912  ;;  %v1997_v58 = vadd.f32 %v1996_v61, %v1995_v2 }
 0x60c   : > { %v1974_v15 = vmul.f32 %v3254_v63, %v4312_v22  ;;  %v2566_v33 = vrot.slane %v4312_v22, %v4042_v50  ;;  %v4378_v63 = vadd.f32 %v1991_v20, %v1990_v46 }
 0x60d   : > { %v1998_v47 = vrot.slane %v1997_v58, 4 }
 0x60f   : > { %v4314_v55 = vpop.permute.xlu0 %1917  ;;  %v1999_v0 = vadd.f32 %v1998_v47, %v1997_v58 }
 0x610   : > { %v1975_v34 = vmul.f32 %v4314_v55, %v3945_v1  ;;  %v2570_v4 = vrot.slane %v4314_v55, %v4045_v51  ;;  %v2553_v55 = vsel %vm1513_vm12, %v2552_v19, %v2548_v21 }
 0x611   : > { %v2000_v32 = vrot.slane %v1999_v0, 2 }
 0x612   : > { %v2005_v12 = vsel %vm988_vm9, %v1975_v34, 0.0 }
 0x613   : > { %v4318_v56 = vpop.permute.xlu0 %1922 }
 0x614   : > { %v1976_v1 = vmul.f32 %v3255_v42, %v4318_v56 }
 0x616   : > { %v2013_v6 = vsel %vm988_vm9, %v1976_v1, 0.0 }
 0x617   : > { %v4325_v57 = vpop.permute.xlu0 %1927 }
 0x618   : > { %v1977_v36 = vmul.f32 %v4325_v57, %v3950_v3  ;;  %v2004_v3 = vsel %vm988_vm9, %v1974_v15, 0.0  ;;  %v2562_v15 = vsel %vm1513_vm12, %v2561_v23, %v2557_v62  ;;  %v2579_v48 = vrot.slane %v4325_v57, %v4045_v51 }
 0x619   : > { %v2006_v41 = vadd.f32 %v2005_v12, %v2004_v3  ;;  %v2575_v12 = vrot.slane %v4318_v56, %v4042_v50  ;;  %v2617_v52 = vsel %vm1578_vm13, %v2562_v15, %v2553_v55 }
 0x61a   : > { %v2014_v59 = vsel %vm988_vm9, %v1977_v36, 0.0  ;;  %v2571_v36 = vsel %vm1513_vm12, %v2570_v4, %v2566_v33  ;;  %v1993_v33 = vrot.slane %v4378_v63, 1 }
 0x61b   : > { %v4339_v39 = vpop.permute.xlu0 %1932  ;;  %v2015_v14 = vadd.f32 %v2014_v59, %v2013_v6  ;;  %v2007_v49 = vrot.slane %v2006_v41, 4  ;;  %v2580_v3 = vsel %vm1513_vm12, %v2579_v48, %v2575_v12  ;;  %v3262_v59 = vld [vmem:[#allocation7 + $0x68] sm:$0xff]  ;;  %v2618_v47 = vsel %vm1580_vm14, %v2571_v36, %v2617_v52 }
 0x61c   : > { %v1978_v27 = vmul.f32 %v3256_v18, %v4339_v39  ;;  %v2584_v58 = vrot.slane %v4339_v39, %v4042_v50  ;;  %v3261_v18 = vld [vmem:[#allocation7 + $0x60] sm:$0xff] }
 0x61d   : > { %v2016_v30 = vrot.slane %v2015_v14, 4  ;;  %v2008_v61 = vadd.f32 %v2007_v49, %v2006_v41 }
 0x61e   : > { %v2022_v43 = vsel %vm988_vm9, %v1978_v27, 0.0  ;;  %v2001_v27 = vadd.f32 %v2000_v32, %v1999_v0  ;;  %v3263_v0 = vld [vmem:[#allocation7 + $0x78] sm:$0xff] }
 0x61f   : > { %v4350_v54 = vpop.permute.xlu0 %1942  ;;  %v2024_v11 = vadd.f32 %v2023_v45, %v2022_v43  ;;  %v2017_v37 = vadd.f32 %v2016_v30, %v2015_v14  ;;  %v2009_v35 = vrot.slane %v2008_v61, 2  ;;  %v2589_v43 = vsel %vm1513_vm12, %v2588_v60, %v2584_v58  ;;  %v3238_v14 = vpop.eup %3237 }
 0x620   : > { %v1980_v44 = vmul.f32 %v3259_v10, %v4350_v54  ;;  %v2593_v17 = vrot.slane %v4350_v54, %v4042_v50  ;;  %v2619_v54 = vsel %vm1582_vm15, %v2580_v3, %v2618_v47  ;;  %v2162_v47 = vld [vmem:[#allocation13] sm:$0xff] }
 0x621   : > { %v2025_v31 = vrot.slane %v2024_v11, 4  ;;  %v2018_v41 = vrot.slane %v2017_v37, 2  ;;  %v2010_v21 = vadd.f32 %v2009_v35, %v2008_v61  ;;  %v2620_v60 = vsel %vm1584_vm0, %v2589_v43, %v2619_v54  ;;  %v2317_v43 = vld [vmem:[#allocation16 + $0x18] sm:$0xff] }
 0x622   : > { %v2031_v13 = vsel %vm988_vm9, %v1980_v44, 0.0 }
 0x623   : > { %v1948_v7 = vpop.permute.xlu0 %1947  ;;  %v2026_v42 = vadd.f32 %v2025_v31, %v2024_v11  ;;  %v2019_v20 = vadd.f32 %v2018_v41, %v2017_v37  ;;  %v976_v41 = vld [vmem:[%s3869_s22] sm:$0xff] }
 0x624   : > { %v1981_v25 = vmul.f32 %v3260_v24, %v1948_v7  ;;  %v2597_v1 = vrot.slane %v1948_v7, %v4045_v51  ;;  %v2002_v7 = vrot.slane %v2001_v27, 1 }
 0x625   : > { %v2027_v6 = vrot.slane %v2026_v42, 2  ;;  %v2020_v61 = vrot.slane %v2019_v20, 1 }
 0x626   : > { %v2032_v16 = vsel %vm988_vm9, %v1981_v25, 0.0  ;;  %v2598_v45 = vsel %vm1513_vm12, %v2597_v1, %v2593_v17  ;;  %v2003_v55 = vadd.f32 %v2002_v7, %v2001_v27 }
 0x627   : > { %v2033_v34 = vadd.f32 %v2032_v16, %v2031_v13  ;;  %v1953_v2 = vpop.permute.xlu0 %1952  ;;  %v2621_v19 = vsel %vm1586_vm1, %v2598_v45, %v2620_v60  ;;  %v2028_v24 = vadd.f32 %v2027_v6, %v2026_v42  ;;  %v2021_v58 = vadd.f32 %v2020_v61, %v2019_v20  ;;  %v2315_v6 = vld [vmem:[#allocation16 + $0x8] sm:$0xff]  ;;  %v2314_v45 = vld [vmem:[#allocation16] sm:$0xff]  ;;  %v2871_v60 = vld [vmem:[%s4540_s17] ss:$0 sm:$0xff] }
 0x628   : > { %v1982_v57 = vmul.f32 %v3261_v18, %v1953_v2  ;;  %v2602_v46 = vrot.slane %v1953_v2, %v4042_v50 }
 0x629   : > { %v2034_v40 = vrot.slane %v2033_v34, 4 }
 0x62a   : > { %v2040_v8 = vsel %vm988_vm9, %v1982_v57, 0.0 }
 0x62b   : > { %v2035_v26 = vadd.f32 %v2034_v40, %v2033_v34  ;;  %v1958_v39 = vpop.permute.xlu0 %1957 }
 0x62c   : > { %v1983_v38 = vmul.f32 %v3262_v59, %v1958_v39  ;;  %v2606_v56 = vrot.slane %v1958_v39, %v4045_v51 }
 0x62d   : > { %v2036_v11 = vrot.slane %v2035_v26, 2 }
 0x62e   : > { %v2041_v5 = vsel %vm988_vm9, %v1983_v38, 0.0  ;;  %v2607_v44 = vsel %vm1513_vm12, %v2606_v56, %v2602_v46  ;;  %v2163_v56 = vld [vmem:[#allocation13 + $0x8] sm:$0xff]  ;;  %v2316_v46 = vld [vmem:[#allocation16 + $0x10] sm:$0xff] }
 0x62f   : > { %v2042_v10 = vadd.f32 %v2041_v5, %v2040_v8  ;;  %v1968_v9 = vpop.permute.xlu0 %1967  ;;  %v2622_v30 = vsel %vm1588_vm2, %v2607_v44, %v2621_v19  ;;  %v2037_v62 = vadd.f32 %v2036_v11, %v2035_v26  ;;  %v3264_v8 = vld [vmem:[#allocation2] sm:$0xff] }
 0x630   : > { %v1985_v50 = vmul.f32 %v3263_v0, %v1968_v9  ;;  %v2615_v49 = vrot.slane %v1968_v9, %v4045_v51  ;;  %v2011_v51 = vrot.slane %v2010_v21, 1  ;;  %v2870_v9 = vld [vmem:[%s4597_s29] ss:$0 sm:$0xff]  ;;  %s2659_s29 = sshll.u32 %s3873_s30, 4  ;;  %s2660_s29 = int_to_ptr.vmem [resolvable:$true] %s2659_s29 }
 0x631   : > { %v2043_v23 = vrot.slane %v2042_v10, 4  ;;  %v2038_v15 = vrot.slane %v2037_v62, 1  ;;  %s3459_s3 = scalar_lea.vmem %s2660_s29, 128 }
 0x632   : > { %v2050_v25 = vsel %vm988_vm9, %v1985_v50, 0.0  ;;  %v2616_v4 = vsel %vm1513_vm12, %v2615_v49, %v2611_v29  ;;  %v2029_v29 = vrot.slane %v2028_v24, 1  ;;  %v2012_v37 = vadd.f32 %v2011_v51, %v2010_v21  ;;  %v2445_v51 = vld [vmem:[#allocation18 + $0x10] sm:$0xff]  ;;  %p3460_p0 = scmp.ne.s32.totalorder %s2660_s29, %s3459_s3 }
 0x633   : > { %v2044_v31 = vadd.f32 %v2043_v23, %v2042_v10  ;;  %v2051_v13 = vadd.f32 %v2050_v25, %v4366_v28  ;;  %v2623_v16 = vsel %vm1590_vm3, %v2616_v4, %v2622_v30  ;;  %v1994_v28 = vadd.f32 %v1993_v33, %v4378_v63  ;;  %v2414_v30 = vpop.permute.xlu0 %2413  ;;  %v2443_v33 = vld [vmem:[#allocation18] sm:$0xff] }
 0x634   : > { %v2625_v32 = vsel %vm4388_vm4, %v2623_v16, 0.0  ;;  %v2030_v42 = vadd.f32 %v2029_v29, %v2028_v24  ;;  %v2039_v18 = vadd.f32 %v2038_v15, %v2037_v62  ;;  %v2446_v16 = vld [vmem:[#allocation18 + $0x18] sm:$0xff]  ;;  %p3461_p12 = pnand %p3460_p0, %p3745_p10 }
 0x635   : > { %v2045_v34 = vrot.slane %v2044_v31, 2  ;;  %v2052_v2 = vrot.slane %v2051_v13, 4  ;;  %2626 = vst.msk [vmem:[%s3873_s30] sm:$0xff] %vm1411_vm11, %v2625_v32  ;;  %v2153_v1 = vsel %vm1578_vm13, %v2003_v55, %v1994_v28  ;;  %3029 = vmatpush3.msra.mxu0 %v2446_v16  ;;  %v2444_v32 = vld [vmem:[#allocation18 + $0x8] sm:$0xff]  ;;  %v2873_v55 = vld [vmem:[%s4542_s19] ss:$0 sm:$0xff] }
 0x636   : > { %v2154_v52 = vsel %vm1580_vm14, %v2012_v37, %v2153_v1  ;;  %3030 = vmatprep.subr.mxu0 %v3582_v53  ;;  %p3462_p5 = pneg %p3461_p12 }
 0x637   : > { %v2046_v48 = vadd.f32 %v2045_v34, %v2044_v31  ;;  %v2053_v36 = vadd.f32 %v2052_v2, %v2051_v13  ;;  %v2155_v27 = vsel %vm1582_vm15, %v2021_v58, %v2154_v52  ;;  %3031 = vmatpush3.msra.mxu0 %v2445_v51 }
 0x638   : > { %v2156_v39 = vsel %vm1584_vm0, %v2030_v42, %v2155_v27  ;;  %3032 = vmatprep.subr.mxu0 %v3582_v53 }
 0x639   : > { %v2047_v40 = vrot.slane %v2046_v48, 1  ;;  %v2054_v12 = vrot.slane %v2053_v36, 2  ;;  %v2157_v3 = vsel %vm1586_vm1, %v2039_v18, %v2156_v39  ;;  %3033 = vmatpush3.msra.mxu0 %v2444_v32 }
 0x63a   : > { %3034 = vmatprep.subr.mxu0 %v3582_v53 }
 0x63b   : > { %v2055_v57 = vadd.f32 %v2054_v12, %v2053_v36  ;;  %v2048_v35 = vadd.f32 %v2047_v40, %v2046_v48  ;;  %3035 = vmatpush3.msra.mxu0 %v2443_v33 }
 0x63d   : > { %v2056_v26 = vrot.slane %v2055_v57, 1  ;;  %v2158_v17 = vsel %vm1588_vm2, %v2048_v35, %v2157_v3 }
 0x63f   : > { %v2057_v63 = vadd.f32 %v2056_v26, %v2055_v57 }
 0x641   : > { %v2159_v59 = vsel %vm1590_vm3, %v2057_v63, %v2158_v17 }
 0x642   : > { %v2161_v38 = vmul.f32 %v3238_v14, %v2159_v59 }
 0x644   : > { %3008 = vmatmul.mubr.msk.f32.vlgmr.msra.gmra.mxu1 %vm988_vm9, %v2161_v38 }
 0x645   : > { %3011 = vmatpush3.msra.mxu1 %v2163_v56  ;;  %3014 = vmatprep.mubr.msk.f32.mxu1 %vm3583_vm10, %v3582_v53 }
 0x646   : > { %3012 = vmatprep.subr.mxu1 %v3582_v53 }
 0x647   : > { %3013 = vmatpush3.msra.mxu1 %v2162_v47 }
 0x648   : > { %3017 = vmatprep.subr.mxu1 %v3582_v53  ;;  %3015 = vmatmul.mubr.msk.f32.vlgmr.msra.gmra.mxu1 %vm1411_vm11, %v976_v41 }
 0x649   : > { %3018 = vmatpush3.msra.mxu1 %v2317_v43  ;;  %3025 = vmatprep.mubr.msk.f32.mxu1 %vm3583_vm10, %v3582_v53 }
 0x64a   : > { %3019 = vmatprep.subr.mxu1 %v3582_v53 }
 0x64b   : > { %3020 = vmatpush3.msra.mxu1 %v2316_v46 }
 0x64c   : > { %3021 = vmatprep.subr.mxu1 %v3582_v53 }
 0x64d   : > { %3022 = vmatpush3.msra.mxu1 %v2315_v6 }
 0x64e   : > { %3023 = vmatprep.subr.mxu1 %v3582_v53 }
 0x64f   : > { %3024 = vmatpush3.msra.mxu1 %v2314_v45 }
 0x650   : > { %3026 = vmatmul.mubr.msk.f32.vlgmr.msra.gmra.mxu1 %vm988_vm9, %v3264_v8 }
 0x704   : > { %v2237_v5 = vpop.f32.mrf.mxu1 }
 0x706   : > { %v3009_v14 = vpop.f32.mrf.mxu1 }
 0x708   : > { %v2310_v54 = vpop.f32.mrf.mxu1 }
 0x709   : > { %v2311_v10 = vadd.f32 %v2310_v54, %v2237_v5 }
 0x70a   : > { %v3016_v11 = vpop.f32.mrf.mxu1 }
 0x710   : > { %v2384_v44 = vpop.f32.mrf.mxu1 }
 0x711   : > { %v2388_v21 = vadd.f32 %v2384_v44, %v2311_v10 }
 0x712   : > { %v3027_v0 = vpop.f32.mrf.mxu1 }
 0x713   : > { %v2396_v50 = vadd.f32 %v2870_v9, %v2388_v21 }
 0x715   : > { %v2404_v49 = vadd.f32 %v2871_v60, %v2396_v50 }
 0x717   : > { %3239 = vtanh.f32 %v2404_v49  ;;  %v2872_v20 = vmul.f32 -1.442695, %v2404_v49 }
 0x719   : > { %3241 = vpow2.f32 %v2872_v20 }
 0x724   : > { %v3240_v7 = vpop.eup %3239 }
 0x725   : > { %2418 = vrot.lane.b32.xlu1 %v3240_v7, %s3587_s1 }
 0x726   : > { %v3242_v19 = vpop.eup %3241 }
 0x727   : > { %v2408_v23 = vadd.f32 1.0, %v3242_v19 }
 0x729   : > { %3243 = vrcp.f32 %v2408_v23 }
 0x736   : > { %v3244_v24 = vpop.eup %3243 }
 0x737   : > { %v2416_v62 = vmul.f32 %v3244_v24, %v2414_v30 }
 0x797   : > { %v2419_v25 = vpop.permute.xlu1 %2418 }
 0x798   : > { %v2421_v4 = vmul.f32 %v3244_v24, %v2419_v25 }
 0x79a   : > { %2423 = vrot.lane.b32.xlu1 %v2421_v4, %s3586_s23 }
 0x80c   : > { %v2424_v31 = vpop.permute.xlu1 %2423 }
 0x80d   : > { %v2426_v13 = vadd.f32 %v2424_v31, %v2416_v62 }
 0x80f   : > { %3245 = vtanh.f32 %v2426_v13 }
 0x81c   : > { %v3246_v61 = vpop.eup %3245 }
 0x81d   : > { %2429 = vrot.lane.b32.xlu0 %v3246_v61, %s3587_s1  ;;  %s3589_s1 = smov [#allocation20]  }
 0x81e   : > { %s3463_s13 = sshll.u32 %s3589_s1, 4  ;;  %s3464_s13 = int_to_ptr.vmem [resolvable:$false] %s3463_s13 }
 0x81f   : > { %s3465_s25 = scalar_lea.vmem %s3464_s13, 256  ;;  %p3466_p1 = scmp.lt.s32.totalorder %s2660_s29, %s3464_s13 }
 0x820   : > { %p3467_p13 = scmp.lt.s32.totalorder %s3465_s25, %s3459_s3 }
 0x822   : > { %p3468_p3 = por %p3467_p13, %p3466_p1 }
 0x824   : > { %p3469_p6 = pnand %p3468_p3, %p3462_p5 }
 0x88f   : > { %v2430_v34 = vpop.permute.xlu0 %2429 }
 0x890   : > { %v2432_v2 = vmul.f32 %v3244_v24, %v2430_v34 }
 0x892   : > { %2434 = vrot.lane.b32.xlu1 %v2432_v2, %s3586_s23  ;;  %s4556_s23 = sshll.u32 %s3728_s15, 7 }
 0x893   : > { %s2657_s28 = scalar_lea.hbm %s4544_s21, %s4556_s23 }
 0x904   : > { %v2435_v29 = vpop.permute.xlu1 %2434 }
 0x905   : > { %2437 = vst.msk [vmem:[#allocation2] sm:$0xff] %vm988_vm9, %v2435_v29  ;;  %3037 = vmatmul.mubr.msk.f32.vlgmr.msra.gmra.mxu0 %vm988_vm9, %v2435_v29 }
 0x9c5   : > { %v2522_v15 = vpop.f32.mrf.mxu0 }
 0x9c6   : > { %v2523_v53 = vadd.f32 %v2873_v55, %v2522_v15 }
 0x9c7   : > { %v3038_v48 = vpop.f32.mrf.mxu0 }
 0x9c8   : > { %2526 = vmax.xlane.f32.xlu0 %v2523_v53 }
 0x9de   : > { %2439 = vrot.lane.b32.xlu0 %v2426_v13, %s3588_s5 }
 0xa51   : > { %v2527_v36 = vpop.xlane.xlu0 %2526 }
 0xa52   : > { %v2528_v37 = vsub.f32 %v2523_v53, %v2527_v36 }
 0xa54   : > { %v2529_v28 = vmul.f32 1.442695, %v2528_v37 }
 0xa55   : > { %v2440_v58 = vpop.permute.xlu0 %2439 }
 0xa56   : > { %3247 = vpow2.f32 %v2529_v28  ;;  %2442 = vst.msk [vmem:[#allocation3] sm:$0xff] %vm988_vm9, %v2440_v58 }
 0xa63   : > { %v3248_v40 = vpop.eup %3247 }
 0xa64   : > { %2531 = vadd.xlane.f32.xlu1 %v3248_v40 }
 0xa65   : > { %3472 = shalt.err (!%p3469_p6)
}
 0xa66   : > { %s3473_s5 = scalar_lea.hbm %s2657_s28, 128  ;;  %s3477_s22 = scalar_lea.hbm %s4544_s21, 1152 }
 0xa67   : > { %p3474_p4 = scmp.ne.s32.totalorder %s2657_s28, %s3473_s5  ;;  %p3478_p9 = scmp.lt.s32.totalorder %s2657_s28, %s4544_s21 }
 0xa68   : > { %p3479_p8 = scmp.lt.s32.totalorder %s3477_s22, %s3473_s5 }
 0xa69   : > { %p3475_p2 = pnand %p3474_p4, %p3745_p10 }
 0xa6a   : > { %p3480_p0 = por %p3479_p8, %p3478_p9 }
 0xa6b   : > { %p3476_p7 = pneg %p3475_p2 }
 0xa6d   : > { %p3481_p12 = pnand %p3480_p0, %p3476_p7 }
 0xa6f   : > { %3484 = shalt.err (!%p3481_p12)
}
 0xa70   : > { %3068 = dma.vmem_to_hbm [thread:$0]  (%p3745_p10), %s2660_s29, 128, %s2657_s28, %s2633_s4  }
 0xa71   : > { %s2646_s3 = sshll.u32 %s3871_s10, 4  ;;  %s4598_s6 = sshll.u32 %s3728_s15, 7  ;;  %s2647_s3 = int_to_ptr.vmem [resolvable:$true] %s2646_s3 }
 0xa72   : > { %s4485_s13 = scalar_lea.hbm %s4543_s20, %s4598_s6  ;;  %s2628_s25 = scalar_lea.sflag [#allocation9], %s3861_s24 }
 0xa73   : > { %s3485_s5 = scalar_lea.vmem %s2647_s3, 128  ;;  %s3590_s28 = smov [#allocation19]  }
 0xa74   : > { %p3486_p5 = scmp.ne.s32.totalorder %s2647_s3, %s3485_s5  ;;  %s3489_s29 = sshll.u32 %s3590_s28, 4  ;;  %s3490_s29 = int_to_ptr.vmem [resolvable:$false] %s3489_s29 }
 0xa75   : > { %s3491_s15 = scalar_lea.vmem %s3490_s29, 256  ;;  %p3492_p3 = scmp.lt.s32.totalorder %s2647_s3, %s3490_s29 }
 0xa76   : > { %p3487_p1 = pnand %p3486_p5, %p3745_p10  ;;  %p3493_p6 = scmp.lt.s32.totalorder %s3491_s15, %s3485_s5 }
 0xa78   : > { %p3488_p13 = pneg %p3487_p1  ;;  %p3494_p4 = por %p3493_p6, %p3492_p3 }
 0xa7a   : > { %p3495_p2 = pnand %p3494_p4, %p3488_p13 }
 0xaed   : > { %v2532_v12 = vpop.xlane.xlu1 %2531 }
 0xaee   : > { %3249 = vlog2.f32 %v2532_v12 }
 0xafb   : > { %v3250_v42 = vpop.eup %3249 }
 0xafc   : > { %v2534_v1 = vmul.f32 0.6931472, %v3250_v42 }
 0xafe   : > { %v2535_v18 = vsub.f32 %v2528_v37, %v2534_v1 }
 0xb00   : > { %v2543_v57 = vsel %vm4388_vm4, %v2535_v18, -3.1780539 }
 0xb01   : > { %2544 = vst [vmem:[%s3871_s10] sm:$0xff] %v2543_v57 }
 0xb02   : > { %3498 = shalt.err (!%p3495_p2)
}
 0xb03   : > { %s3499_s10 = scalar_lea.hbm %s4485_s13, 128  ;;  %s3503_s30 = scalar_lea.hbm %s4543_s20, 1152 }
 0xb04   : > { %p3500_p7 = scmp.ne.s32.totalorder %s4485_s13, %s3499_s10  ;;  %p3504_p0 = scmp.lt.s32.totalorder %s4485_s13, %s4543_s20 }
 0xb05   : > { %p3505_p12 = scmp.lt.s32.totalorder %s3503_s30, %s3499_s10 }
 0xb06   : > { %p3501_p9 = pnand %p3500_p7, %p3745_p10 }
 0xb07   : > { %p3506_p5 = por %p3505_p12, %p3504_p0 }
 0xb08   : > { %p3502_p8 = pneg %p3501_p9 }
 0xb0a   : > { %p3507_p1 = pnand %p3506_p5, %p3502_p8 }
 0xb0c   : > { %3510 = shalt.err (!%p3507_p1)
}
 0xb0d   : > { %3067 = dma.vmem_to_hbm [thread:$0]  (%p3745_p10), %s2647_s3, 128, %s4485_s13, %s2628_s25  }
 0xb0e PF: > { %s4599_s6 = sld [smem:[#allocation31_spill]] }
 0xb0f   : > { %s4600_s23 = sld [smem:[#allocation29_spill]] }
 0xb14   : > { %p3114_p13 = scmp.ge.s32.totalorder %s4599_s6, 2 }
 0xb15   : > { %s2671_s5 = sand.u32 1, %s4600_s23  }
 0xb16   : > { %p3094_p3 = pnand %p3114_p13, %p3749_p11  ;;  %s2672_s28 = scalar_lea.sflag [#allocation9], %s2671_s5 }
 0xb18   : > { %p3095_p6 = pneg %p3094_p3 }
 0xb1a   : > { %3546 = dma.done.wait (%p3095_p6), %s2672_s28, 128  }
 0xb1b   : > { %3548 = vsyncadd (%p3095_p6), %s2672_s28, 4294967168  ;;  %s2681_s29 = scalar_lea.sflag [#allocation21], %s2671_s5 }
 0xb1c   : > { %3550 = dma.done.wait (%p3095_p6), %s2681_s29, 128  }
 0xb1d   : > { %3552 = vsyncadd (%p3095_p6), %s2681_s29, 4294967168  ;;  %s4602_s30 = sld [smem:[#allocation32_spill]]  ;;  %s4605_s10 = smov %s3559_s0 }
 0xb1e   : > { %s4603_s2 = sld [smem:[#allocation30_spill]] }
 0xb1f   : > { %s4604_s4 = sld [smem:[#allocation33_spill]] }
 0xb23   : > { %p47_p10 = scmp.ge.s32.totalorder %s4602_s30, 11  }
 0xb24   : > { %s4606_s0 = smov %s4603_s2 }
 0xb25   :  { %49 = sbr.rel (!%p47_p10) target bundleno = 39 (0x27), region = 181 }
 0xb2a   :  { %2686 = vsyncpa [#allocation8], 1 }
 0xb2b   :  { %2688 = vsyncpa [#allocation8 + $0x1], 1 }
 0xb2c   :  { %2689 = vsyncpa [#allocation11], 1 }
 0xb2d   :  { %2690 = vsyncpa [#allocation14], 1 }
 0xb2e   :  { %2691 = vsyncpa [#allocation17], 1 }
 0xb2f   :  { %2692 = vsyncpa [#allocation9], 1 }
 0xb30   :  { %2694 = vsyncpa [#allocation9 + $0x1], 1 }
 0xb31   :  { %2695 = vsyncpa [#allocation21], 1 }
 0xb32   :  { %2697 = vsyncpa [#allocation21 + $0x1], 1 }

</bundles_post_ra>
